<compile_context>
chip_gen: v7x
topology: tpu7x:2x2x1
jax: 0.10.0
libtpu: 0.0.40
codegen_flags: <defaults>
</compile_context>

<pallas_src>
import functools

import jax
import jax.numpy as jnp
from jax.experimental import pallas as pl
from jax.experimental.pallas import tpu as pltpu


def _gelu_tanh(x):
    # gelu_pytorch_tanh: 0.5*x*(1 + tanh(sqrt(2/pi)*(x + 0.044715*x^3)))
    c = 0.7978845608028654  # sqrt(2/pi)
    return 0.5 * x * (1.0 + jnp.tanh(c * (x + 0.044715 * x * x * x)))


def _mlp_kernel(x_ref, w_fc_ref, b_fc_ref, w_proj_ref, b_proj_ref, o_ref, acc_ref):
    # x_ref:      (tm, H)   token tile (resident across the j axis)
    # w_fc_ref:   (H,  ti)  streamed W_fc column block
    # b_fc_ref:   (1,  ti)  streamed b_fc block
    # w_proj_ref: (ti, H)   streamed W_proj row block
    # b_proj_ref: (1,  H)
    # o_ref:      (tm, H)   output tile (written on last j step)
    # acc_ref:    (tm, H)   f32 accumulator scratch
    j = pl.program_id(1)

    @pl.when(j == 0)
    def _():
        acc_ref[...] = jnp.zeros_like(acc_ref)

    # First matmul on the MXU: native-dtype operands, f32 accumulate.
    h = jnp.dot(x_ref[...], w_fc_ref[...], preferred_element_type=jnp.float32)
    h = h + b_fc_ref[...].astype(jnp.float32)
    h = _gelu_tanh(h)

    # Second matmul: cast activations to the weight dtype (bf16 path when the
    # weights are bf16), accumulate the partial product over j in f32.
    acc_ref[...] += jnp.dot(
        h.astype(w_proj_ref.dtype), w_proj_ref[...],
        preferred_element_type=jnp.float32)

    @pl.when(j == pl.num_programs(1) - 1)
    def _():
        y = acc_ref[...] + b_proj_ref[...].astype(jnp.float32)
        o_ref[...] = y.astype(o_ref.dtype)


def _round_up(x, m):
    return ((x + m - 1) // m) * m


def _vmem_capacity_bytes():
    # Chip-aware VMEM capacity (128 MiB on v5e/v6e, 64 MiB per TC on v7x).
    try:
        return int(pltpu.get_tpu_info().vmem_capacity_bytes)
    except Exception:
        return 64 * 1024 * 1024  # safe fallback, valid on every chip


@functools.partial(jax.jit, static_argnames=("block_tokens", "block_inter"))
def gpt_big_mlp(x, w_fc, b_fc, w_proj, b_proj, *, block_tokens=256,
                block_inter=512):
    T, H = x.shape
    Hi, I = w_fc.shape
    assert Hi == H and w_proj.shape == (I, H)
    assert b_fc.shape == (1, I) and b_proj.shape == (1, H)

    ix = jnp.dtype(x.dtype).itemsize
    iw = jnp.dtype(w_fc.dtype).itemsize
    ib = jnp.dtype(b_fc.dtype).itemsize

    # Sublane granularity: 16 rows for 16-bit dtypes, 8 for 32-bit.
    min_tile = 16 if ix < 4 else 8

    # ---- Token tile -------------------------------------------------------
    tm = min(block_tokens, _round_up(T, min_tile))
    tm = max(min_tile, _round_up(tm, min_tile))
    # Megacore (v7x): make sure the "parallel" grid axis has >= 2 programs.
    if _round_up(T, tm) // tm < 2 and T > min_tile:
        tm = max(min_tile, _round_up((T + 1) // 2, min_tile))

    # ---- Intermediate tile (multiple of 128; prefer multiple of 256) ------
    ti = max(128, (block_inter // 128) * 128)
    if ti >= 256:
        ti = (ti // 256) * 256
    ti = min(ti, _round_up(I, 128))

    # ---- VMEM budgeting ----------------------------------------------------
    # Includes double-buffered BlockSpec tiles, the f32 accumulator, the
    # (tm, ti) f32 GELU intermediate and its cast copy for the second matmul.
    def est_bytes(tm_, ti_):
        return (2 * tm_ * H * ix          # x tile (double-buffered)
                + 2 * H * ti_ * iw        # W_fc block
                + 2 * ti_ * H * iw        # W_proj block
                + 2 * ti_ * ib            # b_fc block
                + 2 * H * ib              # b_proj
                + 2 * tm_ * H * ix        # output tile
                + tm_ * H * 4             # f32 accumulator scratch
                + tm_ * ti_ * 4           # f32 GELU intermediate
                + tm_ * ti_ * iw)         # cast copy for second matmul

    capacity = _vmem_capacity_bytes()
    budget = int(0.75 * capacity)         # headroom for compiler scratch
    while est_bytes(tm, ti) > budget:
        if ti > 256:
            ti = max(256, ((ti // 2) // 128) * 128)
        elif tm > max(64, 2 * min_tile):
            tm = max(64, _round_up(tm // 2, min_tile))
        else:
            break

    Tp = _round_up(T, tm)
    Ip = _round_up(I, ti)

    # ---- Zero-pad ragged dims (gelu(0 + 0) == 0, so padded I-slots and
    #      padded token rows contribute nothing / are sliced off) -----------
    if Tp != T:
        x = jnp.pad(x, ((0, Tp - T), (0, 0)))
    if Ip != I:
        w_fc = jnp.pad(w_fc, ((0, 0), (0, Ip - I)))
        b_fc = jnp.pad(b_fc, ((0, 0), (0, Ip - I)))
        w_proj = jnp.pad(w_proj, ((0, Ip - I), (0, 0)))

    grid = (Tp // tm, Ip // ti)
    vmem_limit = max(32 * 1024 * 1024, int(0.85 * capacity))

    out = pl.pallas_call(
        _mlp_kernel,
        out_shape=jax.ShapeDtypeStruct((Tp, H), x.dtype),
        grid_spec=pltpu.PrefetchScalarGridSpec(
            num_scalar_prefetch=0,
            grid=grid,
            in_specs=[
                pl.BlockSpec((tm, H), lambda i, j: (i, 0)),   # x tile
                pl.BlockSpec((H, ti), lambda i, j: (0, j)),   # W_fc block
                pl.BlockSpec((1, ti), lambda i, j: (0, j)),   # b_fc block
                pl.BlockSpec((ti, H), lambda i, j: (j, 0)),   # W_proj block
                pl.BlockSpec((1, H), lambda i, j: (0, 0)),    # b_proj
            ],
            out_specs=pl.BlockSpec((tm, H), lambda i, j: (i, 0)),
            scratch_shapes=[pltpu.VMEM((tm, H), jnp.float32)],
        ),
        compiler_params=pltpu.CompilerParams(
            dimension_semantics=("parallel", "arbitrary"),
            vmem_limit_bytes=vmem_limit,
        ),
    )(x, w_fc, b_fc, w_proj, b_proj)

    if Tp != T:
        out = out[:T]
    return out


def _reference(x, w_fc, b_fc, w_proj, b_proj):
    h = x.astype(jnp.float32) @ w_fc.astype(jnp.float32) + b_fc.astype(jnp.float32)
    h = _gelu_tanh(h)
    y = h @ w_proj.astype(jnp.float32) + b_proj.astype(jnp.float32)
    return y.astype(x.dtype)


if __name__ == "__main__":
    # Small, module-consistent shapes: hidden=128, intermediate=4*hidden,
    # 200 tokens (ragged: exercises token padding and the megacore split).
    T, H = 200, 128
    I = 4 * H  # 512

    key = jax.random.PRNGKey(0)
    kx, k1, k2, k3, k4 = jax.random.split(key, 5)

    x = jax.random.normal(kx, (T, H), dtype=jnp.float32)
    # Deterministic synthetic parameters (no checkpoint loading).
    w_fc = jax.random.normal(k1, (H, I), dtype=jnp.float32) * 0.02
    b_fc = jax.random.normal(k2, (1, I), dtype=jnp.float32) * 0.02
    w_proj = jax.random.normal(k3, (I, H), dtype=jnp.float32) * 0.02
    b_proj = jax.random.normal(k4, (1, H), dtype=jnp.float32) * 0.02

    # f32 path (strict tolerance).
    out = gpt_big_mlp(x, w_fc, b_fc, w_proj, b_proj,
                      block_tokens=256, block_inter=512)
    out = jax.block_until_ready(out)
    ref = _reference(x, w_fc, b_fc, w_proj, b_proj)
    assert out.shape == (T, H)
    assert jnp.allclose(out, ref, atol=1e-4, rtol=1e-4), "f32 mismatch vs reference"

    # bf16 MXU path: native bf16 operands into the MXU, f32 accumulation.
    xb, wfb, bfb, wpb, bpb = (a.astype(jnp.bfloat16)
                              for a in (x, w_fc, b_fc, w_proj, b_proj))
    out_bf = gpt_big_mlp(xb, wfb, bfb, wpb, bpb,
                         block_tokens=256, block_inter=512)
    out_bf = jax.block_until_ready(out_bf)
    ref_bf = _reference(xb, wfb, bfb, wpb, bpb)
    assert out_bf.shape == (T, H)
    assert jnp.allclose(out_bf.astype(jnp.float32), ref_bf.astype(jnp.float32),
                        atol=2e-2, rtol=2e-2), "bf16 mismatch vs reference"

    # TODO(synk): tensor-parallel sharding (Column/RowParallelLinear all-reduce)
    # and quant_config paths are not modeled; this is the single-device MLP math.

    print("KERNEL_OK")
</pallas_src>

<mosaic_0001>
module attributes {stable_mosaic.version = 11 : i64} {
  func.func @_mlp_kernel(%arg0: i32, %arg1: i32, %arg2: memref<104x128xf32, #tpu.memory_space<vmem>>, %arg3: memref<128x512xf32, #tpu.memory_space<vmem>>, %arg4: memref<1x512xf32, #tpu.memory_space<vmem>>, %arg5: memref<512x128xf32, #tpu.memory_space<vmem>>, %arg6: memref<1x128xf32, #tpu.memory_space<vmem>>, %arg7: memref<104x128xf32, #tpu.memory_space<vmem>>, %arg8: memref<104x128xf32, #tpu.memory_space<vmem>>) attributes {dimension_semantics = [#tpu.dimension_semantics<parallel>, #tpu.dimension_semantics<arbitrary>], iteration_bounds = array<i64: 2, 1>, scalar_prefetch = 0 : i64, scratch_operands = 1 : i64, tpu.core_type = #tpu.core_type<tc>, window_params = [{transform_indices = @transform_0, window_bounds = array<i64: 104, 128>}, {transform_indices = @transform_1, window_bounds = array<i64: 128, 512>}, {transform_indices = @transform_2, window_bounds = array<i64: 1, 512>}, {transform_indices = @transform_3, window_bounds = array<i64: 512, 128>}, {pipeline_mode = #tpu.pipeline_mode<synchronous>, transform_indices = @transform_4, window_bounds = array<i64: 1, 128>}, {transform_indices = @transform_5, window_bounds = array<i64: 104, 128>}]} {
    %c0_i32 = arith.constant 0 : i32
    %0 = arith.cmpi eq, %arg1, %c0_i32 : i32
    %1 = arith.extui %0 : i1 to i32
    %c0_i32_0 = arith.constant 0 : i32
    %2 = arith.cmpi ne, %1, %c0_i32_0 : i32
    scf.if %2 {
      %cst_19 = arith.constant 0.000000e+00 : f32
      %30 = vector.broadcast %cst_19 : f32 to vector<104x128xf32>
      %c0_20 = arith.constant 0 : index
      %c0_21 = arith.constant 0 : index
      %31 = vector.load %arg8[%c0_20, %c0_21] : memref<104x128xf32, #tpu.memory_space<vmem>>, vector<104x128xf32>
      tpu.vector_store %arg8[%c0_20, %c0_21], %30 {strides = array<i32>} : memref<104x128xf32, #tpu.memory_space<vmem>>, vector<104x128xf32>,
    } else {
    }
    %c0 = arith.constant 0 : index
    %c0_1 = arith.constant 0 : index
    %3 = vector.load %arg2[%c0, %c0_1] : memref<104x128xf32, #tpu.memory_space<vmem>>, vector<104x128xf32>
    %c0_2 = arith.constant 0 : index
    %c0_3 = arith.constant 0 : index
    %4 = vector.load %arg3[%c0_2, %c0_3] : memref<128x512xf32, #tpu.memory_space<vmem>>, vector<128x512xf32>
    %cst = arith.constant dense<0.000000e+00> : vector<104x512xf32>
    %5 = tpu.matmul %3, %4, %cst {dimension_numbers = #tpu.dot_dimension_numbers<[1], [0], [0], [1], [0, 0, 1, 1], [], []>} : vector<104x128xf32>, vector<128x512xf32>, vector<104x512xf32> -> vector<104x512xf32>
    %c0_4 = arith.constant 0 : index
    %c0_5 = arith.constant 0 : index
    %6 = vector.load %arg4[%c0_4, %c0_5] : memref<1x512xf32, #tpu.memory_space<vmem>>, vector<1x512xf32>
    %7 = vector.broadcast %6 : vector<1x512xf32> to vector<104x512xf32>
    %8 = arith.addf %5, %7 : vector<104x512xf32>
    %cst_6 = arith.constant 5.000000e-01 : f32
    %9 = vector.broadcast %cst_6 : f32 to vector<104x512xf32>
    %10 = arith.mulf %9, %8 : vector<104x512xf32>
    %cst_7 = arith.constant 4.471500e-02 : f32
    %11 = vector.broadcast %cst_7 : f32 to vector<104x512xf32>
    %12 = arith.mulf %11, %8 : vector<104x512xf32>
    %13 = arith.mulf %12, %8 : vector<104x512xf32>
    %14 = arith.mulf %13, %8 : vector<104x512xf32>
    %15 = arith.addf %8, %14 : vector<104x512xf32>
    %cst_8 = arith.constant 0.797884583 : f32
    %16 = vector.broadcast %cst_8 : f32 to vector<104x512xf32>
    %17 = arith.mulf %16, %15 : vector<104x512xf32>
    %18 = math.tanh %17 : vector<104x512xf32>
    %cst_9 = arith.constant 1.000000e+00 : f32
    %19 = vector.broadcast %cst_9 : f32 to vector<104x512xf32>
    %20 = arith.addf %19, %18 : vector<104x512xf32>
    %21 = arith.mulf %10, %20 : vector<104x512xf32>
    %c0_10 = arith.constant 0 : index
    %c0_11 = arith.constant 0 : index
    %22 = vector.load %arg8[%c0_10, %c0_11] : memref<104x128xf32, #tpu.memory_space<vmem>>, vector<104x128xf32>
    %c0_12 = arith.constant 0 : index
    %c0_13 = arith.constant 0 : index
    %23 = vector.load %arg5[%c0_12, %c0_13] : memref<512x128xf32, #tpu.memory_space<vmem>>, vector<512x128xf32>
    %cst_14 = arith.constant dense<0.000000e+00> : vector<104x128xf32>
    %24 = tpu.matmul %21, %23, %cst_14 {dimension_numbers = #tpu.dot_dimension_numbers<[1], [0], [0], [1], [0, 0, 1, 1], [], []>} : vector<104x512xf32>, vector<512x128xf32>, vector<104x128xf32> -> vector<104x128xf32>
    %25 = arith.addf %22, %24 : vector<104x128xf32>
    %c0_15 = arith.constant 0 : index
    %c0_16 = arith.constant 0 : index
    %26 = vector.load %arg8[%c0_15, %c0_16] : memref<104x128xf32, #tpu.memory_space<vmem>>, vector<104x128xf32>
    tpu.vector_store %arg8[%c0_15, %c0_16], %25 {strides = array<i32>} : memref<104x128xf32, #tpu.memory_space<vmem>>, vector<104x128xf32>,
    %c0_i32_17 = arith.constant 0 : i32
    %27 = arith.cmpi eq, %arg1, %c0_i32_17 : i32
    %28 = arith.extui %27 : i1 to i32
    %c0_i32_18 = arith.constant 0 : i32
    %29 = arith.cmpi ne, %28, %c0_i32_18 : i32
    scf.if %29 {
      %c0_19 = arith.constant 0 : index
      %c0_20 = arith.constant 0 : index
      %30 = vector.load %arg8[%c0_19, %c0_20] : memref<104x128xf32, #tpu.memory_space<vmem>>, vector<104x128xf32>
      %c0_21 = arith.constant 0 : index
      %c0_22 = arith.constant 0 : index
      %31 = vector.load %arg6[%c0_21, %c0_22] : memref<1x128xf32, #tpu.memory_space<vmem>>, vector<1x128xf32>
      %32 = vector.broadcast %31 : vector<1x128xf32> to vector<104x128xf32>
      %33 = arith.addf %30, %32 : vector<104x128xf32>
      %c0_23 = arith.constant 0 : index
      %c0_24 = arith.constant 0 : index
      %34 = vector.load %arg7[%c0_23, %c0_24] : memref<104x128xf32, #tpu.memory_space<vmem>>, vector<104x128xf32>
      tpu.vector_store %arg7[%c0_23, %c0_24], %33 {strides = array<i32>} : memref<104x128xf32, #tpu.memory_space<vmem>>, vector<104x128xf32>,
    } else {
    }
    return
  }
  func.func @transform_0(%arg0: i32, %arg1: i32) -> (i32, i32) {
    %c0_i32 = arith.constant 0 : i32
    %c0_i32_0 = arith.constant 0 : i32
    return %arg0, %c0_i32 : i32, i32
  }
  func.func @transform_1(%arg0: i32, %arg1: i32) -> (i32, i32) {
    %c0_i32 = arith.constant 0 : i32
    %c0_i32_0 = arith.constant 0 : i32
    return %c0_i32, %arg1 : i32, i32
  }
  func.func @transform_2(%arg0: i32, %arg1: i32) -> (i32, i32) {
    %c0_i32 = arith.constant 0 : i32
    %c0_i32_0 = arith.constant 0 : i32
    return %c0_i32, %arg1 : i32, i32
  }
  func.func @transform_3(%arg0: i32, %arg1: i32) -> (i32, i32) {
    %c0_i32 = arith.constant 0 : i32
    %c0_i32_0 = arith.constant 0 : i32
    return %arg1, %c0_i32 : i32, i32
  }
  func.func @transform_4(%arg0: i32, %arg1: i32) -> (i32, i32) {
    %c0_i32 = arith.constant 0 : i32
    %c0_i32_0 = arith.constant 0 : i32
    %c0_i32_1 = arith.constant 0 : i32
    return %c0_i32, %c0_i32_0 : i32, i32
  }
  func.func @transform_5(%arg0: i32, %arg1: i32) -> (i32, i32) {
    %c0_i32 = arith.constant 0 : i32
    %c0_i32_0 = arith.constant 0 : i32
    return %arg0, %c0_i32 : i32, i32
  }
}

</mosaic_0001>

<bundles_post_ra>
// kernel: gpt_big_mlp.1
= control target key start
LH: loop header
LB: loop body
LE: loop exit
PB: predicated region body
PF: predicated region fallthrough
CT: control target
= control target key end

     0   :  { %10 = vsyncpa [#allocation4], 0  ;;  %s3066_s0 = inlined_call_operand.vmem [shape: f32[208,128], index: 0, kind: input, shape index: {}]   ;;  %s3067_s1 = inlined_call_operand.hbm [shape: f32[128,512], index: 1, kind: input, shape index: {}]   ;;  %s3068_s2 = inlined_call_operand.vmem [shape: f32[1,512], index: 2, kind: input, shape index: {}]   ;;  %s3069_s3 = inlined_call_operand.hbm [shape: f32[512,128], index: 3, kind: input, shape index: {}]   ;;  %s3070_s4 = inlined_call_operand.vmem [shape: f32[1,128], index: 4, kind: input, shape index: {}]   ;;  %s3071_s5 = inlined_call_operand.vmem [shape: f32[208,128], index: 5, kind: output, shape index: {}]  }
   0x1   :  { %11 = vsyncpa [#allocation6], 0  ;;  %s2256_s18 = smov 0   ;;  %s2258_s19 = smov 0  }
   0x2   :  { %s2260_s20 = smov 0  }
   0x3 LB: > { %s1692_s21 = sadd.s32 4294967295, %s2217_s20   ;;  %s29_s22 = sadd.s32 1, %s2213_s19  ;;  %s2217_s20 = sphi %s2260_s20, %s17_s20   ;;  %s2213_s19 = sphi %s2258_s19, %s3176_s19   ;;  %s2209_s18 = sphi %s2256_s18, %s3175_s18  }
   0x4   : > { %p31_p0 = scmp.ge.s32.totalorder %s29_s22, 2  ;;  %p1694_p1 = scmp.ge.s32.totalorder %s2217_s20, 1 }
   0x5   : > { %p185_p2 = scmp.lt.s32.totalorder %s2217_s20, 3  ;;  %p2281_p4 = scmp.eq.s32.totalorder %s1692_s21, 0 }
   0x6   : > { %s3178_s22 = smov (%p31_p0, %s29_s22), 0  ;;  %s2219_s25 = smov [#allocation3]  }
   0x7   : > { %p2277_p3 = pnand %p1694_p1, %p185_p2  ;;  %s200_s26 = sshll.u32 %s2219_s25, 4  ;;  %s201_s26 = int_to_ptr.vmem [resolvable:$true] %s200_s26 }
   0x8   : > { %s3106_s24 = scalar_select %p2281_p4, 1, 0 }
   0x9   : > { %s3105_s23 = scalar_select %p2277_p3, 1, 0 }
   0xa   : > { %p1985_p5 = pneg %p2277_p3  ;;  %s2220_s28 = smov [#allocation5]  }
   0xb   : > { %s224_s29 = sshll.u32 %s2220_s28, 4  ;;  %s2131_s7 = scalar_lea.hbm %s3067_s1, 8192  ;;  %s2293_s29 = int_to_ptr.vmem [resolvable:$true] %s224_s29 }
   0xc   : > { %p2289_p6 = pnand %p2281_p4, %p1985_p5  ;;  %p2132_p7 = scmp.ne.s32.totalorder %s3067_s1, %s2131_s7 }
   0xd   : > { %p2138_p11 = scmp.lt.u32.totalorder %s2131_s7, %s3067_s1 }
   0xe   : > { %p2133_p8 = pneg %p2289_p6 }
  0x10   : > { %p2134_p9 = pnand %p2133_p8, %p2132_p7 }
  0x12   : > { %p2135_p10 = pneg %p2134_p9 }
  0x14   : > { %p2140_p12 = pnand %p2138_p11, %p2135_p10 }
  0x16   : > { %2143 = shalt.err (!%p2140_p12)
}
  0x17   : > { %s2144_s12 = scalar_lea.vmem %s201_s26, 8192  ;;  %p2152_p2 = scmp.lt.s32.totalorder %s201_s26, %s201_s26 }
  0x18   : > { %p2145_p13 = scmp.ne.s32.totalorder %s201_s26, %s2144_s12  ;;  %p2153_p5 = scmp.lt.s32.totalorder %s2144_s12, %s2144_s12 }
  0x1a   : > { %p2147_p0 = pnand %p2145_p13, %p2133_p8  ;;  %p2154_p4 = por %p2153_p5, %p2152_p2 }
  0x1c   : > { %p2148_p1 = pneg %p2147_p0 }
  0x1e   : > { %p2155_p3 = pnand %p2154_p4, %p2148_p1 }
  0x20   : > { %2158 = shalt.err (!%p2155_p3)
}
  0x21   : > { %s2221_s13 = smov 512   ;;  %s2222_s14 = smov 32  }
  0x22   : > { %1988 = dma.hbm_to_vmem [thread:$0]  (!%p2289_p6), %s3067_s1, 8192, %s201_s26, [#allocation4], %s2221_s13, %s2221_s13, %s2222_s14  }
  0x23   : > { %s2159_s25 = scalar_lea.hbm %s3069_s3, 8192 }
  0x24   : > { %p2160_p7 = scmp.ne.s32.totalorder %s3069_s3, %s2159_s25  ;;  %p2166_p9 = scmp.lt.u32.totalorder %s2159_s25, %s3069_s3 }
  0x26   : > { %p2162_p3 = pnand %p2160_p7, %p2133_p8 }
  0x28   : > { %p2163_p4 = pneg %p2162_p3 }
  0x2a   : > { %p2168_p10 = pnand %p2166_p9, %p2163_p4 }
  0x2c   : > { %2171 = shalt.err (!%p2168_p10)
}
  0x2d   : > { %s2172_s26 = scalar_lea.vmem %s2293_s29, 8192  ;;  %p2180_p0 = scmp.lt.s32.totalorder %s2293_s29, %s2293_s29 }
  0x2e   : > { %p2173_p11 = scmp.ne.s32.totalorder %s2293_s29, %s2172_s26  ;;  %p2181_p1 = scmp.lt.s32.totalorder %s2172_s26, %s2172_s26 }
  0x30   : > { %p2175_p12 = pnand %p2173_p11, %p2133_p8  ;;  %p2182_p2 = por %p2181_p1, %p2180_p0 }
  0x32   : > { %p2176_p13 = pneg %p2175_p12 }
  0x34   : > { %p2183_p5 = pnand %p2182_p2, %p2176_p13 }
  0x36   : > { %2186 = shalt.err (!%p2183_p5)
}
  0x37   : > { %s2223_s8 = smov 128   ;;  %s2224_s9 = smov 8  }
  0x38   : > { %1991 = dma.hbm_to_vmem [thread:$0]  (!%p2289_p6), %s3069_s3, 8192, %s2293_s29, [#allocation6], %s2223_s8, %s2223_s8, %s2224_s9  }
  0x39   : > { %p3108_p7 = scmp.ne.s32.totalorder %s3105_s23, 0 }
  0x3b   : > { %252 = sbr.rel (%p3108_p7) target bundleno = 681 (0x2a9), region = 40 }
  0x42   : > { %p3109_p8 = scmp.ne.s32.totalorder %s3106_s24, 0 }
  0x44   : > { %2200 = dma.done.wait (%p3109_p8), [#allocation4], 8192  }
  0x45   : > { %2202 = vsyncadd (%p3109_p8), [#allocation4], 4294959104 }
  0x46   : > { %2204 = dma.done.wait (%p3109_p8), [#allocation6], 8192  }
  0x47   : > { %2206 = vsyncadd (%p3109_p8), [#allocation6], 4294959104  ;;  %v2225_v0 = vmov 0.0   ;;  %v338_v1 = vld [vmem:[#allocation3 + $0x8] sm:$0xff]  ;;  %v340_v3 = vld [vmem:[#allocation3 + $0x18] sm:$0xff]  ;;  %s288_s23 = smul.u32 13, %s2209_s18 }
  0x48   : > { %487 = vmatprep.mubr.f32.mxu0 %v2225_v0  ;;  %630 = vmatprep.mubr.f32.mxu1 %v2225_v0  ;;  %v342_v2 = vld [vmem:[#allocation3 + $0x28] sm:$0xff]  ;;  %v344_v5 = vld [vmem:[#allocation3 + $0x38] sm:$0xff]  ;;  %v337_v6 = vld [vmem:[#allocation3] sm:$0xff] }
  0x49   : > { %v1849_v4 = vpack.c.bf16 %v342_v2, %v338_v1  ;;  %v341_v7 = vld [vmem:[#allocation3 + $0x20] sm:$0xff]  ;;  %v1881_v8 = vpack.c.bf16 %v344_v5, %v340_v3  ;;  %v339_v10 = vld [vmem:[#allocation3 + $0x10] sm:$0xff]  ;;  %v346_v12 = vld [vmem:[#allocation3 + $0x48] sm:$0xff]  ;;  %p2357_p6 = scmp.lt.s32.totalorder %s288_s23, 25 }
  0x4a   : > { %v1851_v9 = vpack.c.bf16 %v341_v7, %v337_v6  ;;  %v343_v11 = vld [vmem:[#allocation3 + $0x30] sm:$0xff]  ;;  %v350_v14 = vld [vmem:[#allocation3 + $0x68] sm:$0xff]  ;;  %v348_v15 = vld [vmem:[#allocation3 + $0x58] sm:$0xff] }
  0x4b   : > { %1850 = vmatprep.subr.bf16.mxu0 %v1849_v4  ;;  %v1883_v13 = vpack.c.bf16 %v343_v11, %v339_v10  ;;  %v352_v16 = vld [vmem:[#allocation3 + $0x78] sm:$0xff]  ;;  %1882 = vmatprep.subr.bf16.mxu1 %v1881_v8  ;;  %v1853_v17 = vpack.c.bf16 %v350_v14, %v346_v12  ;;  %v345_v19 = vld [vmem:[#allocation3 + $0x40] sm:$0xff]  ;;  %v347_v21 = vld [vmem:[#allocation3 + $0x50] sm:$0xff]  ;;  %s3180_s23 = smov (!%p2357_p6, %s288_s23), 25 }
  0x4c   : > { %1852 = vmatpush1.bf16.msra.mxu0 %v1851_v9  ;;  %v1885_v18 = vpack.c.bf16 %v352_v16, %v348_v15  ;;  %v349_v20 = vld [vmem:[#allocation3 + $0x60] sm:$0xff]  ;;  %v351_v23 = vld [vmem:[#allocation3 + $0x70] sm:$0xff]  ;;  %v354_v24 = vld [vmem:[#allocation3 + $0x88] sm:$0xff]  ;;  %s1702_s18 = sshll.u32 %s3180_s23, 3 }
  0x4d   : > { %1884 = vmatpush1.bf16.msra.mxu1 %v1883_v13  ;;  %v1855_v22 = vpack.c.bf16 %v349_v20, %v345_v19  ;;  %v358_v25 = vld [vmem:[#allocation3 + $0xa8] sm:$0xff]  ;;  %1854 = vmatprep.subr.bf16.mxu0 %v1853_v17  ;;  %v1887_v26 = vpack.c.bf16 %v351_v23, %v347_v21  ;;  %v356_v28 = vld [vmem:[#allocation3 + $0x98] sm:$0xff]  ;;  %v353_v30 = vld [vmem:[#allocation3 + $0x80] sm:$0xff]  ;;  %s2373_s12 = scalar_lea.vmem %s3066_s0, %s1702_s18  ;;  %s3029_s25 = scalar_lea.vmem %s3071_s5, %s1702_s18 }
  0x4e   : > { %1886 = vmatprep.subr.bf16.mxu1 %v1885_v18  ;;  %v1857_v27 = vpack.c.bf16 %v358_v25, %v354_v24  ;;  %v360_v29 = vld [vmem:[#allocation3 + $0xb8] sm:$0xff]  ;;  %v357_v32 = vld [vmem:[#allocation3 + $0xa0] sm:$0xff]  ;;  %v355_v33 = vld [vmem:[#allocation3 + $0x90] sm:$0xff] }
  0x4f   : > { %v1889_v31 = vpack.c.bf16 %v360_v29, %v356_v28  ;;  %v359_v34 = vld [vmem:[#allocation3 + $0xb0] sm:$0xff]  ;;  %v1859_v35 = vpack.c.bf16 %v357_v32, %v353_v30  ;;  %v362_v36 = vld [vmem:[#allocation3 + $0xc8] sm:$0xff]  ;;  %v364_v38 = vld [vmem:[#allocation3 + $0xd8] sm:$0xff] }
  0x50   : > { %1856 = vmatpush1.bf16.msra.mxu0 %v1855_v22  ;;  %v366_v37 = vld [vmem:[#allocation3 + $0xe8] sm:$0xff]  ;;  %v1891_v39 = vpack.c.bf16 %v359_v34, %v355_v33  ;;  %v368_v41 = vld [vmem:[#allocation3 + $0xf8] sm:$0xff]  ;;  %v361_v42 = vld [vmem:[#allocation3 + $0xc0] sm:$0xff] }
  0x51   : > { %1888 = vmatpush1.bf16.msra.mxu1 %v1887_v26  ;;  %1858 = vmatprep.subr.bf16.mxu0 %v1857_v27  ;;  %v1861_v40 = vpack.c.bf16 %v366_v37, %v362_v36  ;;  %v365_v43 = vld [vmem:[#allocation3 + $0xe0] sm:$0xff]  ;;  %v1893_v44 = vpack.c.bf16 %v368_v41, %v364_v38  ;;  %v363_v45 = vld [vmem:[#allocation3 + $0xd0] sm:$0xff]  ;;  %v370_v47 = vld [vmem:[#allocation3 + $0x108] sm:$0xff] }
  0x52   : > { %1890 = vmatprep.subr.bf16.mxu1 %v1889_v31  ;;  %v367_v46 = vld [vmem:[#allocation3 + $0xf0] sm:$0xff]  ;;  %v374_v48 = vld [vmem:[#allocation3 + $0x128] sm:$0xff]  ;;  %v372_v49 = vld [vmem:[#allocation3 + $0x118] sm:$0xff]  ;;  %v1863_v51 = vpack.c.bf16 %v365_v43, %v361_v42 }
  0x53   : > { %v376_v50 = vld [vmem:[#allocation3 + $0x138] sm:$0xff]  ;;  %v1895_v52 = vpack.c.bf16 %v367_v46, %v363_v45  ;;  %v1865_v53 = vpack.c.bf16 %v374_v48, %v370_v47  ;;  %v369_v54 = vld [vmem:[#allocation3 + $0x100] sm:$0xff]  ;;  %v371_v56 = vld [vmem:[#allocation3 + $0x110] sm:$0xff] }
  0x54   : > { %1860 = vmatpush1.bf16.msra.mxu0 %v1859_v35  ;;  %v373_v55 = vld [vmem:[#allocation3 + $0x120] sm:$0xff]  ;;  %v1897_v57 = vpack.c.bf16 %v376_v50, %v372_v49  ;;  %v375_v58 = vld [vmem:[#allocation3 + $0x130] sm:$0xff]  ;;  %v378_v59 = vld [vmem:[#allocation3 + $0x148] sm:$0xff] }
  0x55   : > { %1892 = vmatpush1.bf16.msra.mxu1 %v1891_v39  ;;  %1862 = vmatprep.subr.bf16.mxu0 %v1861_v40  ;;  %v382_v60 = vld [vmem:[#allocation3 + $0x168] sm:$0xff]  ;;  %v380_v61 = vld [vmem:[#allocation3 + $0x158] sm:$0xff]  ;;  %v1867_v63 = vpack.c.bf16 %v373_v55, %v369_v54  ;;  %v1899_v1 = vpack.c.bf16 %v375_v58, %v371_v56  ;;  %v377_v3 = vld [vmem:[#allocation3 + $0x140] sm:$0xff] }
  0x56   : > { %1894 = vmatprep.subr.bf16.mxu1 %v1893_v44  ;;  %v384_v62 = vld [vmem:[#allocation3 + $0x178] sm:$0xff]  ;;  %v1869_v2 = vpack.c.bf16 %v382_v60, %v378_v59  ;;  %v381_v4 = vld [vmem:[#allocation3 + $0x160] sm:$0xff]  ;;  %v379_v5 = vld [vmem:[#allocation3 + $0x150] sm:$0xff] }
  0x57   : > { %v1901_v6 = vpack.c.bf16 %v384_v62, %v380_v61  ;;  %v383_v7 = vld [vmem:[#allocation3 + $0x170] sm:$0xff]  ;;  %v386_v8 = vld [vmem:[#allocation3 + $0x188] sm:$0xff]  ;;  %v388_v10 = vld [vmem:[#allocation3 + $0x198] sm:$0xff]  ;;  %v1871_v12 = vpack.c.bf16 %v381_v4, %v377_v3 }
  0x58   : > { %1864 = vmatpush1.bf16.msra.mxu0 %v1863_v51  ;;  %v390_v9 = vld [vmem:[#allocation3 + $0x1a8] sm:$0xff]  ;;  %v392_v11 = vld [vmem:[#allocation3 + $0x1b8] sm:$0xff]  ;;  %v1903_v13 = vpack.c.bf16 %v383_v7, %v379_v5  ;;  %v385_v15 = vld [vmem:[#allocation3 + $0x180] sm:$0xff] }
  0x59   : > { %1896 = vmatpush1.bf16.msra.mxu1 %v1895_v52  ;;  %1866 = vmatprep.subr.bf16.mxu0 %v1865_v53  ;;  %v1873_v14 = vpack.c.bf16 %v390_v9, %v386_v8  ;;  %v389_v16 = vld [vmem:[#allocation3 + $0x1a0] sm:$0xff]  ;;  %v387_v17 = vld [vmem:[#allocation3 + $0x190] sm:$0xff]  ;;  %v1905_v18 = vpack.c.bf16 %v392_v11, %v388_v10  ;;  %v394_v20 = vld [vmem:[#allocation3 + $0x1c8] sm:$0xff] }
  0x5a   : > { %1898 = vmatprep.subr.bf16.mxu1 %v1897_v57  ;;  %v391_v19 = vld [vmem:[#allocation3 + $0x1b0] sm:$0xff]  ;;  %v398_v21 = vld [vmem:[#allocation3 + $0x1e8] sm:$0xff]  ;;  %v396_v22 = vld [vmem:[#allocation3 + $0x1d8] sm:$0xff]  ;;  %v1875_v24 = vpack.c.bf16 %v389_v16, %v385_v15 }
  0x5b   : > { %v400_v23 = vld [vmem:[#allocation3 + $0x1f8] sm:$0xff]  ;;  %v1907_v25 = vpack.c.bf16 %v391_v19, %v387_v17  ;;  %v1877_v26 = vpack.c.bf16 %v398_v21, %v394_v20  ;;  %v393_v27 = vld [vmem:[#allocation3 + $0x1c0] sm:$0xff]  ;;  %v395_v29 = vld [vmem:[#allocation3 + $0x1d0] sm:$0xff] }
  0x5c   : > { %1868 = vmatpush1.bf16.msra.mxu0 %v1867_v63  ;;  %v397_v28 = vld [vmem:[#allocation3 + $0x1e0] sm:$0xff]  ;;  %v1909_v30 = vpack.c.bf16 %v400_v23, %v396_v22  ;;  %v399_v31 = vld [vmem:[#allocation3 + $0x1f0] sm:$0xff]  ;;  %v1207_v33 = vld [vmem:[#allocation5 + $0x88] sm:$0xff] }
  0x5d   : > { %1900 = vmatpush1.bf16.msra.mxu1 %v1899_v1  ;;  %1870 = vmatprep.subr.bf16.mxu0 %v1869_v2  ;;  %v1206_v32 = vld [vmem:[#allocation5 + $0x80] sm:$0xff]  ;;  %v1239_v35 = vld [vmem:[#allocation5 + $0x188] sm:$0xff]  ;;  %v1879_v36 = vpack.c.bf16 %v397_v28, %v393_v27  ;;  %v1911_v37 = vpack.c.bf16 %v399_v31, %v395_v29  ;;  %v1208_v44 = vld [vmem:[#allocation5 + $0x90] sm:$0xff] }
  0x5e   : > { %1902 = vmatprep.subr.bf16.mxu1 %v1901_v6  ;;  %v1238_v34 = vld [vmem:[#allocation5 + $0x180] sm:$0xff]  ;;  %v1913_v38 = vpack.c.bf16 %v1207_v33, %v1206_v32  ;;  %v1191_v41 = vld [vmem:[#allocation5 + $0x8] sm:$0xff]  ;;  %v1209_v45 = vld [vmem:[#allocation5 + $0x98] sm:$0xff] }
  0x5f   : > { %v1945_v39 = vpack.c.bf16 %v1239_v35, %v1238_v34  ;;  %v1190_v40 = vld [vmem:[#allocation5] sm:$0xff]  ;;  %v1223_v43 = vld [vmem:[#allocation5 + $0x108] sm:$0xff]  ;;  %v1240_v47 = vld [vmem:[#allocation5 + $0x190] sm:$0xff]  ;;  %v1917_v51 = vpack.c.bf16 %v1209_v45, %v1208_v44 }
  0x60   : > { %1872 = vmatpush1.bf16.msra.mxu0 %v1871_v12  ;;  %v1222_v42 = vld [vmem:[#allocation5 + $0x100] sm:$0xff]  ;;  %v1241_v48 = vld [vmem:[#allocation5 + $0x198] sm:$0xff]  ;;  %v1915_v49 = vpack.c.bf16 %v1191_v41, %v1190_v40  ;;  %v1192_v52 = vld [vmem:[#allocation5 + $0x10] sm:$0xff] }
  0x61   : > { %1904 = vmatpush1.bf16.msra.mxu1 %v1903_v13  ;;  %1874 = vmatprep.subr.bf16.mxu0 %v1873_v14  ;;  %v324_v46 = vld [vmem:[%s2373_s12] sm:$0xff]  ;;  %v1947_v50 = vpack.c.bf16 %v1223_v43, %v1222_v42  ;;  %v1193_v53 = vld [vmem:[#allocation5 + $0x18] sm:$0xff]  ;;  %v1224_v54 = vld [vmem:[#allocation5 + $0x110] sm:$0xff]  ;;  %v1949_v55 = vpack.c.bf16 %v1241_v48, %v1240_v47 }
  0x62   : > { %1906 = vmatprep.subr.bf16.mxu1 %v1905_v18  ;;  %v1225_v56 = vld [vmem:[#allocation5 + $0x118] sm:$0xff]  ;;  %v1210_v57 = vld [vmem:[#allocation5 + $0xa0] sm:$0xff]  ;;  %v1211_v58 = vld [vmem:[#allocation5 + $0xa8] sm:$0xff]  ;;  %v1919_v62 = vpack.c.bf16 %v1193_v53, %v1192_v52 }
  0x63   : > { %v325_v59 = vld [vmem:[%s2373_s12 + $0x8] sm:$0xff]  ;;  %v1242_v60 = vld [vmem:[#allocation5 + $0x1a0] sm:$0xff]  ;;  %v1951_v63 = vpack.c.bf16 %v1225_v56, %v1224_v54  ;;  %v1921_v1 = vpack.c.bf16 %v1211_v58, %v1210_v57  ;;  %v1212_v7 = vld [vmem:[#allocation5 + $0xb0] sm:$0xff] }
  0x64   : > { %1876 = vmatpush1.bf16.msra.mxu0 %v1875_v24  ;;  %v1243_v61 = vld [vmem:[#allocation5 + $0x1a8] sm:$0xff]  ;;  %v1194_v2 = vld [vmem:[#allocation5 + $0x20] sm:$0xff]  ;;  %v1213_v8 = vld [vmem:[#allocation5 + $0xb8] sm:$0xff] }
  0x65   : > { %1908 = vmatpush1.bf16.msra.mxu1 %v1907_v25  ;;  %1878 = vmatprep.subr.bf16.mxu0 %v1877_v26  ;;  %v1195_v3 = vld [vmem:[#allocation5 + $0x28] sm:$0xff]  ;;  %v1226_v4 = vld [vmem:[#allocation5 + $0x120] sm:$0xff]  ;;  %v1953_v5 = vpack.c.bf16 %v1243_v61, %v1242_v60  ;;  %v326_v9 = vld [vmem:[%s2373_s12 + $0x10] sm:$0xff]  ;;  %v1925_v14 = vpack.c.bf16 %v1213_v8, %v1212_v7 }
  0x66   : > { %1910 = vmatprep.subr.bf16.mxu1 %v1909_v30  ;;  %v1227_v6 = vld [vmem:[#allocation5 + $0x128] sm:$0xff]  ;;  %v1244_v10 = vld [vmem:[#allocation5 + $0x1b0] sm:$0xff]  ;;  %v1245_v11 = vld [vmem:[#allocation5 + $0x1b8] sm:$0xff]  ;;  %v1923_v12 = vpack.c.bf16 %v1195_v3, %v1194_v2 }
  0x67   : > { %v1955_v13 = vpack.c.bf16 %v1227_v6, %v1226_v4  ;;  %v1196_v15 = vld [vmem:[#allocation5 + $0x30] sm:$0xff]  ;;  %v1197_v16 = vld [vmem:[#allocation5 + $0x38] sm:$0xff]  ;;  %v1957_v17 = vpack.c.bf16 %v1245_v11, %v1244_v10  ;;  %v328_v23 = vld [vmem:[%s2373_s12 + $0x20] sm:$0xff] }
  0x68   : > { %1880 = vmatpush1.bf16.msra.mxu0 %v1879_v36  ;;  %v1228_v18 = vld [vmem:[#allocation5 + $0x130] sm:$0xff]  ;;  %v1229_v19 = vld [vmem:[#allocation5 + $0x138] sm:$0xff]  ;;  %v1927_v21 = vpack.c.bf16 %v1197_v16, %v1196_v15  ;;  %v329_v24 = vld [vmem:[%s2373_s12 + $0x28] sm:$0xff]  ;;  %v403_v16 = vlaneseq }
  0x69   : > { %1912 = vmatpush1.bf16.msra.mxu1 %v1911_v37  ;;  %1914 = vmatprep.subr.bf16.mxu0 %v1913_v38  ;;  %v327_v20 = vld [vmem:[%s2373_s12 + $0x18] sm:$0xff]  ;;  %v1959_v22 = vpack.c.bf16 %v1229_v19, %v1228_v18  ;;  %v330_v25 = vld [vmem:[%s2373_s12 + $0x30] sm:$0xff]  ;;  %v332_v27 = vld [vmem:[%s2373_s12 + $0x40] sm:$0xff] }
  0x6a   : > { %1946 = vmatprep.subr.bf16.mxu1 %v1945_v39  ;;  %v331_v26 = vld [vmem:[%s2373_s12 + $0x38] sm:$0xff]  ;;  %v333_v28 = vld [vmem:[%s2373_s12 + $0x48] sm:$0xff]  ;;  %v334_v29 = vld [vmem:[%s2373_s12 + $0x50] sm:$0xff] }
  0x6b   : > { %488 = vmatmul.mubr.f32.vlgmr.msra.gmra.mrb[0].mxu0 %v324_v46  ;;  %v335_v30 = vld [vmem:[%s2373_s12 + $0x58] sm:$0xff]  ;;  %v336_v31 = vld [vmem:[%s2373_s12 + $0x60] sm:$0xff]  ;;  %v1215_v33 = vld [vmem:[#allocation5 + $0xc8] sm:$0xff] }
  0x6c   : > { %631 = vmatmul.mubr.f32.vlgmr.msra.gmra.mrb[0].mxu1 %v324_v46  ;;  %493 = vmatprep.mubr.f32.mxu0 %v2225_v0  ;;  %v1214_v32 = vld [vmem:[#allocation5 + $0xc0] sm:$0xff]  ;;  %v1247_v36 = vld [vmem:[#allocation5 + $0x1c8] sm:$0xff]  ;;  %v1216_v44 = vld [vmem:[#allocation5 + $0xd0] sm:$0xff] }
  0x6d   : > { %636 = vmatprep.mubr.f32.mxu1 %v2225_v0  ;;  %1916 = vmatpush3.bf16.msra.mxu0 %v1915_v49  ;;  %v1246_v34 = vld [vmem:[#allocation5 + $0x1c0] sm:$0xff]  ;;  %v1929_v35 = vpack.c.bf16 %v1215_v33, %v1214_v32  ;;  %v1199_v38 = vld [vmem:[#allocation5 + $0x48] sm:$0xff]  ;;  %v1217_v45 = vld [vmem:[#allocation5 + $0xd8] sm:$0xff] }
  0x6e   : > { %1948 = vmatpush3.bf16.msra.mxu1 %v1947_v50  ;;  %1918 = vmatprep.subr.bf16.mxu0 %v1917_v51  ;;  %v1198_v37 = vld [vmem:[#allocation5 + $0x40] sm:$0xff]  ;;  %v1961_v39 = vpack.c.bf16 %v1247_v36, %v1246_v34  ;;  %v1231_v42 = vld [vmem:[#allocation5 + $0x148] sm:$0xff]  ;;  %v1933_v46 = vpack.c.bf16 %v1217_v45, %v1216_v44  ;;  %v1249_v47 = vld [vmem:[#allocation5 + $0x1d8] sm:$0xff] }
  0x6f   : > { %494 = vmatmul.mubr.f32.gmra.mrb[2].mxu0 %v325_v59  ;;  %1950 = vmatprep.subr.bf16.mxu1 %v1949_v55  ;;  %v1931_v40 = vpack.c.bf16 %v1199_v38, %v1198_v37  ;;  %v1230_v41 = vld [vmem:[#allocation5 + $0x140] sm:$0xff]  ;;  %v1200_v48 = vld [vmem:[#allocation5 + $0x50] sm:$0xff]  ;;  %v1201_v49 = vld [vmem:[#allocation5 + $0x58] sm:$0xff] }
  0x70   : > { %637 = vmatmul.mubr.f32.gmra.mrb[2].mxu1 %v325_v59  ;;  %499 = vmatprep.mubr.f32.mxu0 %v2225_v0  ;;  %v1963_v43 = vpack.c.bf16 %v1231_v42, %v1230_v41  ;;  %v1935_v51 = vpack.c.bf16 %v1201_v49, %v1200_v48  ;;  %v1232_v52 = vld [vmem:[#allocation5 + $0x150] sm:$0xff]  ;;  %v1233_v53 = vld [vmem:[#allocation5 + $0x158] sm:$0xff]  ;;  %v1218_v55 = vld [vmem:[#allocation5 + $0xe0] sm:$0xff] }
  0x71   : > { %642 = vmatprep.mubr.f32.mxu1 %v2225_v0  ;;  %1920 = vmatpush3.bf16.msra.mxu0 %v1919_v62  ;;  %v1967_v54 = vpack.c.bf16 %v1233_v53, %v1232_v52  ;;  %v1219_v56 = vld [vmem:[#allocation5 + $0xe8] sm:$0xff]  ;;  %v1250_v57 = vld [vmem:[#allocation5 + $0x1e0] sm:$0xff]  ;;  %v1220_v4 = vld [vmem:[#allocation5 + $0xf0] sm:$0xff] }
  0x72   : > { %1952 = vmatpush3.bf16.msra.mxu1 %v1951_v63  ;;  %1922 = vmatprep.subr.bf16.mxu0 %v1921_v1  ;;  %v1937_v58 = vpack.c.bf16 %v1219_v56, %v1218_v55  ;;  %v1251_v59 = vld [vmem:[#allocation5 + $0x1e8] sm:$0xff]  ;;  %v1202_v60 = vld [vmem:[#allocation5 + $0x60] sm:$0xff]  ;;  %v1252_v6 = vld [vmem:[#allocation5 + $0x1f0] sm:$0xff] }
  0x73   : > { %500 = vmatmul.mubr.f32.gmra.mrb[4].mxu0 %v326_v9  ;;  %1954 = vmatprep.subr.bf16.mxu1 %v1953_v5  ;;  %v1203_v61 = vld [vmem:[#allocation5 + $0x68] sm:$0xff]  ;;  %v1969_v62 = vpack.c.bf16 %v1251_v59, %v1250_v57  ;;  %v1234_v1 = vld [vmem:[#allocation5 + $0x160] sm:$0xff]  ;;  %v1221_v5 = vld [vmem:[#allocation5 + $0xf8] sm:$0xff] }
  0x74   : > { %643 = vmatmul.mubr.f32.gmra.mrb[4].mxu1 %v326_v9  ;;  %505 = vmatprep.mubr.f32.mxu0 %v2225_v0  ;;  %v1939_v63 = vpack.c.bf16 %v1203_v61, %v1202_v60  ;;  %v1235_v2 = vld [vmem:[#allocation5 + $0x168] sm:$0xff]  ;;  %v1941_v7 = vpack.c.bf16 %v1221_v5, %v1220_v4  ;;  %v1253_v8 = vld [vmem:[#allocation5 + $0x1f8] sm:$0xff]  ;;  %v1204_v9 = vld [vmem:[#allocation5 + $0x70] sm:$0xff] }
  0x75   : > { %648 = vmatprep.mubr.f32.mxu1 %v2225_v0  ;;  %1924 = vmatpush3.bf16.msra.mxu0 %v1923_v12  ;;  %v1971_v3 = vpack.c.bf16 %v1235_v2, %v1234_v1  ;;  %v1205_v10 = vld [vmem:[#allocation5 + $0x78] sm:$0xff]  ;;  %v1973_v11 = vpack.c.bf16 %v1253_v8, %v1252_v6  ;;  %v401_v19 = vld [vmem:[%s3068_s2] sm:$0xf] }
  0x76   : > { %1956 = vmatpush3.bf16.msra.mxu1 %v1955_v13  ;;  %1926 = vmatprep.subr.bf16.mxu0 %v1925_v14  ;;  %v1943_v12 = vpack.c.bf16 %v1205_v10, %v1204_v9  ;;  %v1236_v13 = vld [vmem:[#allocation5 + $0x170] sm:$0xff]  ;;  %v1237_v14 = vld [vmem:[#allocation5 + $0x178] sm:$0xff] }
  0x77   : > { %506 = vmatmul.mubr.f32.gmra.mrb[6].mxu0 %v327_v20  ;;  %1958 = vmatprep.subr.bf16.mxu1 %v1957_v17  ;;  %v1975_v15 = vpack.c.bf16 %v1237_v14, %v1236_v13  ;;  %v404_v17 = vshrl.u32 %v403_v16, 7 }
  0x78   : > { %649 = vmatmul.mubr.f32.gmra.mrb[6].mxu1 %v327_v20  ;;  %511 = vmatprep.mubr.f32.mxu0 %v2225_v0 }
  0x79   : > { %654 = vmatprep.mubr.f32.mxu1 %v2225_v0  ;;  %1928 = vmatpush3.bf16.msra.mxu0 %v1927_v21  ;;  %v405_v18 = vsub.s32 0, %v404_v17  ;;  %v413_v20 = vsub.s32 2, %v404_v17  ;;  %v409_v21 = vsub.s32 1, %v404_v17 }
  0x7a   : > { %1960 = vmatpush3.bf16.msra.mxu1 %v1959_v22  ;;  %1930 = vmatprep.subr.bf16.mxu0 %v1929_v35 }
  0x7b   : > { %512 = vmatmul.mubr.f32.gmra.mrb[8].mxu0 %v328_v23  ;;  %1962 = vmatprep.subr.bf16.mxu1 %v1961_v39  ;;  %v2415_v22 = vrot.slane %v401_v19, %v405_v18 }
  0x7c   : > { %655 = vmatmul.mubr.f32.gmra.mrb[8].mxu1 %v328_v23  ;;  %517 = vmatprep.mubr.f32.mxu0 %v2225_v0  ;;  %v417_v23 = vsub.s32 3, %v404_v17 }
  0x7d   : > { %660 = vmatprep.mubr.f32.mxu1 %v2225_v0  ;;  %1932 = vmatpush3.bf16.msra.mxu0 %v1931_v40 }
  0x7e   : > { %1964 = vmatpush3.bf16.msra.mxu1 %v1963_v43  ;;  %1934 = vmatprep.subr.bf16.mxu0 %v1933_v46 }
  0x7f   : > { %518 = vmatmul.mubr.f32.gmra.mrb[10].mxu0 %v329_v24 }
  0x80   : > { %661 = vmatmul.mubr.f32.gmra.mrb[10].mxu1 %v329_v24  ;;  %523 = vmatprep.mubr.f32.mxu0 %v2225_v0  ;;  %v2417_v24 = vrot.slane %v401_v19, %v413_v20 }
  0x81   : > { %666 = vmatprep.mubr.f32.mxu1 %v2225_v0  ;;  %1936 = vmatpush3.bf16.msra.mxu0 %v1935_v51 }
  0x82   : > { %1938 = vmatprep.subr.bf16.mxu0 %v1937_v58 }
  0x83   : > { %524 = vmatmul.mubr.f32.gmra.mrb[12].mxu0 %v330_v25 }
  0x84   : > { %667 = vmatmul.mubr.f32.gmra.mrb[12].mxu1 %v330_v25  ;;  %529 = vmatprep.mubr.f32.mxu0 %v2225_v0  ;;  %v2419_v25 = vrot.slane %v401_v19, %v409_v21 }
  0x85   : > { %672 = vmatprep.mubr.f32.mxu1 %v2225_v0  ;;  %1940 = vmatpush3.bf16.msra.mxu0 %v1939_v63 }
  0x86   : > { %1942 = vmatprep.subr.bf16.mxu0 %v1941_v7 }
  0x87   : > { %530 = vmatmul.mubr.f32.gmra.mrb[14].mxu0 %v331_v26 }
  0x88   : > { %673 = vmatmul.mubr.f32.gmra.mrb[14].mxu1 %v331_v26  ;;  %535 = vmatprep.mubr.f32.mxu0 %v2225_v0 }
  0x89   : > { %678 = vmatprep.mubr.f32.mxu1 %v2225_v0  ;;  %1944 = vmatpush3.bf16.msra.mxu0 %v1943_v12 }
  0x8b   : > { %536 = vmatmul.mubr.f32.gmra.mrb[16].mxu0 %v332_v27 }
  0x8c   : > { %679 = vmatmul.mubr.f32.gmra.mrb[16].mxu1 %v332_v27  ;;  %541 = vmatprep.mubr.f32.mxu0 %v2225_v0 }
  0x8d   : > { %684 = vmatprep.mubr.f32.mxu1 %v2225_v0 }
  0x8f   : > { %542 = vmatmul.mubr.f32.gmra.mrb[18].mxu0 %v333_v28 }
  0x90   : > { %685 = vmatmul.mubr.f32.gmra.mrb[18].mxu1 %v333_v28  ;;  %547 = vmatprep.mubr.f32.mxu0 %v2225_v0 }
  0x91   : > { %690 = vmatprep.mubr.f32.mxu1 %v2225_v0 }
  0x93   : > { %548 = vmatmul.mubr.f32.gmra.mrb[20].mxu0 %v334_v29 }
  0x94   : > { %691 = vmatmul.mubr.f32.gmra.mrb[20].mxu1 %v334_v29  ;;  %553 = vmatprep.mubr.f32.mxu0 %v2225_v0 }
  0x95   : > { %696 = vmatprep.mubr.f32.mxu1 %v2225_v0 }
  0x97   : > { %554 = vmatmul.mubr.f32.gmra.mrb[22].mxu0 %v335_v30 }
  0x98   : > { %697 = vmatmul.mubr.f32.gmra.mrb[22].mxu1 %v335_v30  ;;  %559 = vmatprep.mubr.f32.mxu0 %v2225_v0  ;;  %v2422_v30 = vrot.slane %v401_v19, %v417_v23 }
  0x99   : > { %702 = vmatprep.mubr.f32.mxu1 %v2225_v0  ;;  %v1248_v0 = vld [vmem:[#allocation5 + $0x1d0] sm:$0xff] }
  0x9a   : > { %v1965_v50 = vpack.c.bf16 %v1249_v47, %v1248_v0 }
  0x9b   : > { %560 = vmatmul.mubr.f32.gmra.mrb[24].mxu0 %v336_v31 }
  0x9c   : > { %703 = vmatmul.mubr.f32.gmra.mrb[24].mxu1 %v336_v31  ;;  %1966 = vmatprep.subr.bf16.mxu1 %v1965_v50 }
  0x9d   : > { %1968 = vmatpush3.bf16.msra.mxu1 %v1967_v54 }
  0x9e   : > { %1970 = vmatprep.subr.bf16.mxu1 %v1969_v62 }
  0xa1   : > { %1972 = vmatpush3.bf16.msra.mxu1 %v1971_v3 }
  0xa2   : > { %1974 = vmatprep.subr.bf16.mxu1 %v1973_v11 }
  0xa5   : > { %1976 = vmatpush3.bf16.msra.mxu1 %v1975_v15 }
 0x13e   : > { %v489_v26 = vpop.f32.mrb[0].mxu0 }
 0x13f   : > { %v490_v27 = vadd.f32 %v489_v26, %v2415_v22  ;;  %v632_v28 = vpop.f32.mrb[0].mxu1  ;;  %v491_v29 = vpop.f32.mrb[1].mxu0 }
 0x140   : > { %v633_v31 = vadd.f32 %v632_v28, %v2417_v24  ;;  %v492_v32 = vadd.f32 %v491_v29, %v2419_v25  ;;  %v634_v33 = vpop.f32.mrb[1].mxu1 }
 0x141   : > { %v761_v34 = vmul.f32 0.044715, %v490_v27  ;;  %v2427_v39 = vadd.f32 %v634_v33, %v2422_v30  ;;  %v2445_v57 = vmul.f32 0.5, %v490_v27 }
 0x142   : > { %v763_v35 = vmul.f32 0.044715, %v633_v31  ;;  %v762_v36 = vmul.f32 0.044715, %v492_v32  ;;  %v495_v37 = vpop.f32.mrb[2].mxu0  ;;  %v2451_v63 = vmul.f32 0.5, %v633_v31 }
 0x143   : > { %v813_v38 = vmul.f32 %v761_v34, %v490_v27  ;;  %v638_v40 = vpop.f32.mrb[2].mxu1  ;;  %v497_v41 = vpop.f32.mrb[3].mxu0  ;;  %v2430_v44 = vadd.f32 %v495_v37, %v2415_v22  ;;  %v764_v52 = vmul.f32 0.044715, %v2427_v39  ;;  %v2456_v2 = vmul.f32 0.5, %v492_v32 }
 0x144   : > { %v815_v42 = vmul.f32 %v763_v35, %v633_v31  ;;  %v814_v43 = vmul.f32 %v762_v36, %v492_v32  ;;  %v640_v45 = vpop.f32.mrb[3].mxu1  ;;  %v2433_v47 = vadd.f32 %v638_v40, %v2417_v24  ;;  %v2436_v48 = vadd.f32 %v497_v41, %v2419_v25 }
 0x145   : > { %v865_v0 = vmul.f32 %v813_v38, %v490_v27  ;;  %v2440_v53 = vadd.f32 %v640_v45, %v2422_v30  ;;  %v765_v59 = vmul.f32 0.044715, %v2430_v44  ;;  %v816_v8 = vmul.f32 %v764_v52, %v2427_v39 }
 0x146   : > { %v867_v46 = vmul.f32 %v815_v42, %v633_v31  ;;  %v501_v49 = vpop.f32.mrb[4].mxu0  ;;  %v866_v50 = vmul.f32 %v814_v43, %v492_v32  ;;  %v767_v3 = vmul.f32 0.044715, %v2433_v47  ;;  %v766_v4 = vmul.f32 0.044715, %v2436_v48 }
 0x147   : > { %v917_v51 = vadd.f32 %v865_v0, %v490_v27  ;;  %v2443_v54 = vadd.f32 %v501_v49, %v2415_v22  ;;  %v644_v55 = vpop.f32.mrb[4].mxu1  ;;  %v503_v56 = vpop.f32.mrb[5].mxu0  ;;  %v768_v9 = vmul.f32 0.044715, %v2440_v53  ;;  %v2470_v15 = vmul.f32 %v765_v59, %v2430_v44 }
 0x148   : > { %v919_v58 = vadd.f32 %v867_v46, %v633_v31  ;;  %v2449_v60 = vadd.f32 %v644_v55, %v2417_v24  ;;  %v646_v61 = vpop.f32.mrb[5].mxu1  ;;  %v2454_v1 = vadd.f32 %v503_v56, %v2419_v25  ;;  %v918_v7 = vadd.f32 %v866_v50, %v492_v32 }
 0x149   : > { %v969_v62 = vmul.f32 0.7978846, %v917_v51  ;;  %v2461_v5 = vadd.f32 %v646_v61, %v2422_v30  ;;  %v769_v10 = vmul.f32 0.044715, %v2443_v54  ;;  %v2484_v23 = vmul.f32 %v767_v3, %v2433_v47 }
 0x14a   : > { %v507_v6 = vpop.f32.mrb[6].mxu0  ;;  %v971_v14 = vmul.f32 0.7978846, %v919_v58  ;;  %v771_v16 = vmul.f32 0.044715, %v2449_v60  ;;  %v818_v26 = vmul.f32 %v766_v4, %v2436_v48  ;;  %v2489_v31 = vmul.f32 %v768_v9, %v2440_v53 }
 0x14b   : > { %v2467_v11 = vadd.f32 %v507_v6, %v2415_v22  ;;  %v650_v12 = vpop.f32.mrb[6].mxu1  ;;  %v509_v13 = vpop.f32.mrb[7].mxu0  ;;  %2027 = vtanh.f32 %v969_v62  ;;  %v770_v19 = vmul.f32 0.044715, %v2454_v1  ;;  %v772_v27 = vmul.f32 0.044715, %v2461_v5 }
 0x14c   : > { %v2474_v17 = vadd.f32 %v650_v12, %v2417_v24  ;;  %v652_v18 = vpop.f32.mrb[7].mxu1  ;;  %v2478_v20 = vadd.f32 %v509_v13, %v2419_v25  ;;  %v970_v29 = vmul.f32 0.7978846, %v918_v7  ;;  %v2504_v42 = vmul.f32 %v769_v10, %v2443_v54 }
 0x14d   : > { %v2481_v21 = vadd.f32 %v652_v18, %v2422_v30  ;;  %v773_v32 = vmul.f32 0.044715, %v2467_v11  ;;  %v2507_v43 = vmul.f32 %v771_v16, %v2449_v60  ;;  %v2511_v0 = vmul.f32 %v770_v19, %v2454_v1 }
 0x14e   : > { %v513_v28 = vpop.f32.mrb[8].mxu0  ;;  %v775_v33 = vmul.f32 0.044715, %v2474_v17  ;;  %v774_v37 = vmul.f32 0.044715, %v2478_v20  ;;  %2029 = vtanh.f32 %v970_v29  ;;  %v2514_v46 = vmul.f32 %v772_v27, %v2461_v5 }
 0x14f   : > { %v2494_v34 = vadd.f32 %v513_v28, %v2415_v22  ;;  %v656_v35 = vpop.f32.mrb[8].mxu1  ;;  %v515_v36 = vpop.f32.mrb[9].mxu0  ;;  %2031 = vtanh.f32 %v971_v14  ;;  %v776_v45 = vmul.f32 0.044715, %v2481_v21  ;;  %v868_v51 = vmul.f32 %v816_v8, %v2427_v39 }
 0x150   : > { %v2498_v38 = vadd.f32 %v656_v35, %v2417_v24  ;;  %v2501_v40 = vadd.f32 %v515_v36, %v2419_v25  ;;  %v658_v41 = vpop.f32.mrb[9].mxu1  ;;  %v2521_v52 = vmul.f32 %v773_v32, %v2467_v11  ;;  %v2528_v61 = vmul.f32 0.5, %v2427_v39 }
 0x151   : > { %3111 = vst [vmem:[#allocation9_spill] sm:$0xff] %v2494_v34  ;;  %v2517_v49 = vadd.f32 %v658_v41, %v2422_v30  ;;  %v777_v55 = vmul.f32 0.044715, %v2494_v34  ;;  %v2531_v62 = vmul.f32 %v775_v33, %v2474_v17  ;;  %v2534_v3 = vmul.f32 %v774_v37, %v2478_v20 }
 0x152   : > { %3112 = vst [vmem:[#allocation10_spill] sm:$0xff] %v2498_v38  ;;  %v519_v50 = vpop.f32.mrb[10].mxu0  ;;  %v779_v4 = vmul.f32 0.044715, %v2498_v38  ;;  %v778_v6 = vmul.f32 0.044715, %v2501_v40  ;;  %v2539_v8 = vmul.f32 %v776_v45, %v2481_v21  ;;  %v920_v12 = vadd.f32 %v868_v51, %v2427_v39 }
 0x153   : > { %3113 = vst [vmem:[#allocation11_spill] sm:$0xff] %v2517_v49  ;;  %v2525_v56 = vadd.f32 %v519_v50, %v2415_v22  ;;  %v662_v58 = vpop.f32.mrb[10].mxu1  ;;  %v521_v59 = vpop.f32.mrb[11].mxu0  ;;  %v780_v13 = vmul.f32 0.044715, %v2517_v49  ;;  %v2553_v18 = vmul.f32 0.5, %v2436_v48  ;;  %v870_v19 = vmul.f32 %v818_v26, %v2436_v48 }
 0x154   : > { %v664_v7 = vpop.f32.mrb[11].mxu1  ;;  %v2542_v9 = vadd.f32 %v662_v58, %v2417_v24  ;;  %v2545_v10 = vadd.f32 %v521_v59, %v2419_v25  ;;  %v2557_v28 = vmul.f32 %v777_v55, %v2494_v34  ;;  %v972_v35 = vmul.f32 0.7978846, %v920_v12 }
 0x155   : > { %3114 = vst [vmem:[#allocation12_spill] sm:$0xff] %v2525_v56  ;;  %v2550_v14 = vadd.f32 %v664_v7, %v2422_v30  ;;  %v2028_v27 = vpop.eup %2027  ;;  %v781_v29 = vmul.f32 0.044715, %v2525_v56  ;;  %v2564_v36 = vmul.f32 %v779_v4, %v2498_v38  ;;  %v2567_v37 = vmul.f32 %v778_v6, %v2501_v40 }
 0x156   : > { %3115 = vst [vmem:[#allocation13_spill] sm:$0xff] %v2542_v9  ;;  %v525_v16 = vpop.f32.mrb[12].mxu0  ;;  %3116 = vst [vmem:[#allocation14_spill] sm:$0xff] %v2557_v28  ;;  %v783_v50 = vmul.f32 0.044715, %v2542_v9  ;;  %2033 = vtanh.f32 %v972_v35  ;;  %v2581_v59 = vmul.f32 %v780_v13, %v2517_v49  ;;  %v1073_v7 = vadd.f32 1.0, %v2028_v27 }
 0x157   : > { %v2561_v32 = vadd.f32 %v525_v16, %v2415_v22  ;;  %v668_v39 = vpop.f32.mrb[12].mxu1  ;;  %v527_v33 = vpop.f32.mrb[13].mxu0  ;;  %3118 = vst [vmem:[#allocation16_spill] sm:$0xff] %v2564_v36  ;;  %v782_v51 = vmul.f32 0.044715, %v2545_v10  ;;  %v922_v12 = vadd.f32 %v870_v19, %v2436_v48 }
 0x158   : > { %v2570_v26 = vadd.f32 %v668_v39, %v2417_v24  ;;  %v2573_v41 = vadd.f32 %v527_v33, %v2419_v25  ;;  %v670_v45 = vpop.f32.mrb[13].mxu1  ;;  %v2030_v58 = vpop.eup %2029  ;;  %3120 = vst [vmem:[#allocation18_spill] sm:$0xff] %v2581_v59  ;;  %v784_v4 = vmul.f32 0.044715, %v2550_v14  ;;  %v2586_v39 = vmul.f32 %v781_v29, %v2525_v56 }
 0x159   : > { %3117 = vst [vmem:[#allocation15_spill] sm:$0xff] %v2561_v32  ;;  %v2578_v55 = vadd.f32 %v670_v45, %v2422_v30  ;;  %v2032_v16 = vpop.eup %2031  ;;  %v785_v33 = vmul.f32 0.044715, %v2561_v32  ;;  %v1074_v38 = vadd.f32 1.0, %v2030_v58  ;;  %v2601_v29 = vmul.f32 %v783_v50, %v2542_v9 }
 0x15a   : > { %3119 = vst [vmem:[#allocation17_spill] sm:$0xff] %v2570_v26  ;;  %v531_v6 = vpop.f32.mrb[14].mxu0  ;;  %3121 = vst [vmem:[#allocation19_spill] sm:$0xff] %v2586_v39  ;;  %v787_v13 = vmul.f32 0.044715, %v2570_v26  ;;  %v2614_v49 = vmul.f32 %v784_v4, %v2550_v14 }
 0x15b   : > { %v2590_v45 = vadd.f32 %v531_v6, %v2415_v22  ;;  %v674_v35 = vpop.f32.mrb[14].mxu1  ;;  %v533_v36 = vpop.f32.mrb[15].mxu0  ;;  %v786_v28 = vmul.f32 0.044715, %v2573_v41  ;;  %3125 = vst [vmem:[#allocation23_spill] sm:$0xff] %v2601_v29  ;;  %v2604_v6 = vmul.f32 %v782_v51, %v2545_v10  ;;  %v1126_v58 = vmul.f32 %v1074_v38, %v2456_v2 }
 0x15c   : > { %v2595_v27 = vadd.f32 %v674_v35, %v2417_v24  ;;  %v2598_v48 = vadd.f32 %v533_v36, %v2419_v25  ;;  %v676_v19 = vpop.f32.mrb[15].mxu1  ;;  %v788_v39 = vmul.f32 0.044715, %v2578_v55  ;;  %v1125_v35 = vmul.f32 %v1073_v7, %v2445_v57 }
 0x15d   : > { %3122 = vst [vmem:[#allocation20_spill] sm:$0xff] %v2590_v45  ;;  %v789_v56 = vmul.f32 0.044715, %v2590_v45  ;;  %v2610_v34 = vadd.f32 %v676_v19, %v2422_v30  ;;  %v1075_v36 = vadd.f32 1.0, %v2032_v16  ;;  %v2617_v50 = vmul.f32 %v785_v33, %v2561_v32  ;;  %1318 = vmatprep.mubr.f32.mxu0 %v1126_v58 }
 0x15e   : > { %3123 = vst [vmem:[#allocation21_spill] sm:$0xff] %v2595_v27  ;;  %3124 = vst [vmem:[#allocation22_spill] sm:$0xff] %v2598_v48  ;;  %v537_v59 = vpop.f32.mrb[16].mxu0  ;;  %v791_v51 = vmul.f32 0.044715, %v2595_v27  ;;  %v2621_v9 = vmul.f32 %v787_v13, %v2570_v26  ;;  %v2624_v19 = vmul.f32 %v786_v28, %v2573_v41  ;;  %1319 = vmatmul.mubr.f32.vlgmr.msra.gmra.mrb[26].mxu0 %v1125_v35 }
 0x15f   : > { %3126 = vst [vmem:[#allocation24_spill] sm:$0xff] %v2617_v50  ;;  %v680_v29 = vpop.f32.mrb[16].mxu1  ;;  %v539_v2 = vpop.f32.mrb[17].mxu0  ;;  %v974_v38 = vmul.f32 0.7978846, %v922_v12  ;;  %v2628_v4 = vadd.f32 %v537_v59, %v2415_v22  ;;  %v2631_v16 = vmul.f32 %v788_v39, %v2578_v55  ;;  %v1127_v13 = vmul.f32 %v1075_v36, %v2451_v63 }
 0x160   : > { %3127 = vst [vmem:[#allocation25_spill] sm:$0xff] %v2621_v9  ;;  %v790_v57 = vmul.f32 0.044715, %v2598_v48  ;;  %v682_v7 = vpop.f32.mrb[17].mxu1  ;;  %v2634_v33 = vadd.f32 %v680_v29, %v2417_v24  ;;  %v2637_v12 = vadd.f32 %v539_v2, %v2419_v25  ;;  %v792_v28 = vmul.f32 0.044715, %v2610_v34  ;;  %v2034_v39 = vpop.eup %2033 }
 0x161   : > { %3128 = vst [vmem:[#allocation26_spill] sm:$0xff] %v2628_v4  ;;  %2035 = vtanh.f32 %v974_v38  ;;  %v2642_v58 = vadd.f32 %v682_v7, %v2422_v30  ;;  %v872_v59 = vmul.f32 %v2489_v31, %v2440_v53  ;;  %v2647_v9 = vmul.f32 %v789_v56, %v2590_v45 }
 0x162   : > { %3129 = vst [vmem:[#allocation27_spill] sm:$0xff] %v2634_v33  ;;  %v543_v35 = vpop.f32.mrb[18].mxu0  ;;  %v2650_v29 = vmul.f32 %v791_v51, %v2595_v27  ;;  %v2653_v2 = vmul.f32 0.5, %v2440_v53  ;;  %v869_v63 = vmul.f32 %v2470_v15, %v2430_v44  ;;  %v2658_v7 = vmul.f32 %v790_v57, %v2598_v48 }
 0x163   : > { %3130 = vst [vmem:[#allocation28_spill] sm:$0xff] %v2642_v58  ;;  %3131 = vst [vmem:[#allocation29_spill] sm:$0xff] %v2647_v9  ;;  %v686_v36 = vpop.f32.mrb[18].mxu1  ;;  %v545_v38 = vpop.f32.mrb[19].mxu0  ;;  %v1076_v31 = vadd.f32 1.0, %v2034_v39  ;;  %v924_v56 = vadd.f32 %v872_v59, %v2440_v53  ;;  %v871_v15 = vmul.f32 %v2484_v23, %v2433_v47  ;;  %v2668_v45 = vmul.f32 %v792_v28, %v2610_v34 }
 0x164   : > { %3132 = vst [vmem:[#allocation30_spill] sm:$0xff] %v2650_v29  ;;  %3133 = vst [vmem:[#allocation31_spill] sm:$0xff] %v2658_v7  ;;  %v793_v26 = vmul.f32 0.044715, %v2628_v4  ;;  %v688_v9 = vpop.f32.mrb[19].mxu1  ;;  %v921_v27 = vadd.f32 %v869_v63, %v2430_v44  ;;  %v2674_v50 = vadd.f32 %v543_v35, %v2415_v22  ;;  %v2677_v63 = vadd.f32 %v686_v36, %v2417_v24 }
 0x165   : > { %v795_v51 = vmul.f32 0.044715, %v2634_v33  ;;  %v794_v29 = vmul.f32 0.044715, %v2637_v12  ;;  %v1128_v57 = vmul.f32 %v1076_v31, %v2528_v61  ;;  %v796_v39 = vmul.f32 0.044715, %v2642_v58 }
 0x166   : > { %v976_v7 = vmul.f32 0.7978846, %v924_v56  ;;  %v549_v48 = vpop.f32.mrb[20].mxu0  ;;  %v973_v53 = vmul.f32 0.7978846, %v921_v27  ;;  %v923_v59 = vadd.f32 %v871_v15, %v2433_v47  ;;  %3134 = vst [vmem:[#allocation32_spill] sm:$0xff] %v2677_v63  ;;  %v2680_v28 = vmul.f32 %v793_v26, %v2628_v4 }
 0x167   : > { %v692_v32 = vpop.f32.mrb[20].mxu1  ;;  %v551_v23 = vpop.f32.mrb[21].mxu0  ;;  %1448 = vmatprep.mubr.f32.mxu1 %v1128_v57  ;;  %v2683_v61 = vmul.f32 0.5, %v2430_v44  ;;  %v2686_v27 = vadd.f32 %v545_v38, %v2419_v25  ;;  %v2689_v35 = vmul.f32 0.5, %v2433_v47  ;;  %v2692_v56 = vadd.f32 %v688_v9, %v2422_v30 }
 0x168   : > { %3135 = vst [vmem:[#allocation33_spill] sm:$0xff] %v2680_v28  ;;  %2037 = vtanh.f32 %v976_v7  ;;  %v694_v31 = vpop.f32.mrb[21].mxu1  ;;  %1449 = vmatmul.mubr.f32.vlgmr.msra.gmra.mrb[26].mxu1 %v1127_v13  ;;  %v975_v36 = vmul.f32 0.7978846, %v923_v59  ;;  %v2695_v26 = vmul.f32 %v795_v51, %v2634_v33  ;;  %v2698_v7 = vmul.f32 %v794_v29, %v2637_v12 }
 0x169   : > { %2039 = vtanh.f32 %v973_v53  ;;  %v2701_v44 = vmul.f32 %v796_v39, %v2642_v58  ;;  %v874_v13 = vmul.f32 %v2511_v0, %v2454_v1  ;;  %v797_v15 = vmul.f32 0.044715, %v2674_v50 }
 0x16a   : > { %3136 = vst [vmem:[#allocation34_spill] sm:$0xff] %v2695_v26  ;;  %3137 = vst [vmem:[#allocation35_spill] sm:$0xff] %v2698_v7  ;;  %v2705_v38 = vpop.f32.mrb[22].mxu0  ;;  %2041 = vtanh.f32 %v975_v36  ;;  %v799_v9 = vmul.f32 0.044715, %v2677_v63  ;;  %v876_v51 = vmul.f32 %v2514_v46, %v2461_v5  ;;  %v873_v59 = vmul.f32 %v2504_v42, %v2443_v54 }
 0x16b   : > { %3138 = vst [vmem:[#allocation36_spill] sm:$0xff] %v2701_v44  ;;  %v2036_v47 = vpop.eup %2035  ;;  %v2711_v57 = vpop.f32.mrb[22].mxu1  ;;  %v798_v53 = vmul.f32 0.044715, %v2686_v27  ;;  %v926_v0 = vadd.f32 %v874_v13, %v2454_v1  ;;  %v800_v26 = vmul.f32 0.044715, %v2692_v56  ;;  %v875_v28 = vmul.f32 %v2507_v43, %v2449_v60 }
 0x16c   : > { %v2713_v29 = vpop.f32.mrb[23].mxu0  ;;  %v1078_v39 = vadd.f32 1.0, %v2036_v47  ;;  %v2719_v36 = vpop.f32.mrb[23].mxu1  ;;  %v2723_v33 = vmul.f32 0.5, %v2454_v1  ;;  %v928_v46 = vadd.f32 %v876_v51, %v2461_v5  ;;  %v925_v13 = vadd.f32 %v873_v59, %v2443_v54 }
 0x16d   : > { %v978_v4 = vmul.f32 0.7978846, %v926_v0  ;;  %v2731_v44 = vadd.f32 %v549_v48, %v2415_v22  ;;  %v2736_v58 = vmul.f32 %v797_v15, %v2674_v50  ;;  %v2739_v1 = vmul.f32 %v799_v9, %v2677_v63 }
 0x16e   : > { %v1130_v47 = vmul.f32 %v1078_v39, %v2553_v18  ;;  %v2733_v42 = vpop.f32.mrb[24].mxu0  ;;  %v980_v51 = vmul.f32 0.7978846, %v928_v46  ;;  %v927_v7 = vadd.f32 %v875_v28, %v2449_v60  ;;  %v2743_v43 = vmul.f32 %v798_v53, %v2686_v27 }
 0x16f   : > { %3139 = vst [vmem:[#allocation37_spill] sm:$0xff] %v2736_v58  ;;  %3140 = vst [vmem:[#allocation38_spill] sm:$0xff] %v2739_v1  ;;  %2043 = vtanh.f32 %v978_v4  ;;  %v977_v18 = vmul.f32 0.7978846, %v925_v13  ;;  %v2746_v48 = vadd.f32 %v692_v32, %v2417_v24  ;;  %v2748_v39 = vpop.f32.mrb[24].mxu1  ;;  %v2750_v0 = vpop.f32.mrb[25].mxu0  ;;  %v2756_v28 = vadd.f32 %v551_v23, %v2419_v25 }
 0x170   : > { %1323 = vmatprep.mubr.f32.mxu0 %v1130_v47  ;;  %v2753_v15 = vmul.f32 0.5, %v2461_v5  ;;  %2045 = vtanh.f32 %v980_v51  ;;  %v979_v9 = vmul.f32 0.7978846, %v927_v7  ;;  %v2758_v59 = vpop.f32.mrb[25].mxu1  ;;  %v2761_v4 = vmul.f32 %v800_v26, %v2692_v56 }
 0x171   : > { %v717_v32 = vmul.f32 0.5, %v2443_v54  ;;  %2047 = vtanh.f32 %v977_v18  ;;  %v801_v46 = vmul.f32 0.044715, %v2731_v44  ;;  %v2766_v5 = vadd.f32 %v694_v31, %v2422_v30 }
 0x172   : > { %v2038_v53 = vpop.eup %2037  ;;  %2049 = vtanh.f32 %v979_v9  ;;  %v878_v23 = vmul.f32 %v2534_v3, %v2478_v20  ;;  %v719_v51 = vmul.f32 0.5, %v2449_v60  ;;  %v803_v26 = vmul.f32 0.044715, %v2746_v48 }
 0x173   : > { %v2040_v47 = vpop.eup %2039  ;;  %v1080_v13 = vadd.f32 1.0, %v2038_v53  ;;  %v880_v54 = vmul.f32 %v2539_v8, %v2481_v21  ;;  %v802_v53 = vmul.f32 0.044715, %v2756_v28  ;;  %v877_v31 = vmul.f32 %v2521_v52, %v2467_v11 }
 0x174   : > { %v1077_v7 = vadd.f32 1.0, %v2040_v47  ;;  %v2042_v18 = vpop.eup %2041  ;;  %v930_v9 = vadd.f32 %v878_v23, %v2478_v20  ;;  %v879_v63 = vmul.f32 %v2531_v62, %v2474_v17  ;;  %v2784_v8 = vmul.f32 %v801_v46, %v2731_v44 }
 0x175   : > { %v1132_v1 = vmul.f32 %v1080_v13, %v2653_v2  ;;  %v1079_v47 = vadd.f32 1.0, %v2042_v18  ;;  %v932_v60 = vadd.f32 %v880_v54, %v2481_v21  ;;  %v804_v2 = vmul.f32 0.044715, %v2766_v5 }
 0x176   : > { %v1129_v3 = vmul.f32 %v1077_v7, %v2683_v61  ;;  %v982_v13 = vmul.f32 0.7978846, %v930_v9  ;;  %v929_v23 = vadd.f32 %v877_v31, %v2467_v11  ;;  %v931_v61 = vadd.f32 %v879_v63, %v2474_v17 }
 0x177   : > { %1453 = vmatprep.mubr.f32.mxu1 %v1132_v1  ;;  %v1131_v52 = vmul.f32 %v1079_v47, %v2689_v35  ;;  %v984_v58 = vmul.f32 0.7978846, %v932_v60  ;;  %v2792_v7 = vadd.f32 %v2705_v38, %v2415_v22  ;;  %v2795_v62 = vmul.f32 %v803_v26, %v2746_v48 }
 0x178   : > { %1324 = vmatmul.mubr.f32.gmra.mrb[28].mxu0 %v1129_v3  ;;  %v2798_v1 = vmul.f32 %v802_v53, %v2756_v28  ;;  %2051 = vtanh.f32 %v982_v13  ;;  %v981_v46 = vmul.f32 0.7978846, %v929_v23  ;;  %v722_v18 = vmul.f32 0.5, %v2478_v20 }
 0x179   : > { %v2044_v54 = vpop.eup %2043  ;;  %1454 = vmatmul.mubr.f32.gmra.mrb[28].mxu1 %v1131_v52  ;;  %2053 = vtanh.f32 %v984_v58  ;;  %v983_v35 = vmul.f32 0.7978846, %v931_v61  ;;  %v2803_v63 = vadd.f32 %v2711_v57, %v2417_v24  ;;  %v724_v26 = vmul.f32 0.5, %v2481_v21 }
 0x17a   : > { %v2046_v38 = vpop.eup %2045  ;;  %v1082_v9 = vadd.f32 1.0, %v2044_v54  ;;  %2055 = vtanh.f32 %v981_v46  ;;  %v2808_v53 = vadd.f32 %v2713_v29, %v2419_v25  ;;  %v2811_v47 = vmul.f32 %v804_v2, %v2766_v5  ;;  %v3141_v54 = vld [vmem:[#allocation11_spill] sm:$0xff] }
 0x17b   : > { %v2048_v31 = vpop.eup %2047  ;;  %v1084_v3 = vadd.f32 1.0, %v2046_v38  ;;  %2057 = vtanh.f32 %v983_v35  ;;  %v805_v20 = vmul.f32 0.044715, %v2792_v7  ;;  %v2817_v21 = vadd.f32 %v2719_v36, %v2422_v30  ;;  %v3142_v35 = vld [vmem:[#allocation18_spill] sm:$0xff] }
 0x17c   : > { %v2050_v58 = vpop.eup %2049  ;;  %v1134_v57 = vmul.f32 %v1082_v9, %v2723_v33  ;;  %v1081_v60 = vadd.f32 1.0, %v2048_v31  ;;  %v882_v29 = vmul.f32 %v2567_v37, %v2501_v40  ;;  %v721_v2 = vmul.f32 0.5, %v2467_v11  ;;  %v3143_v9 = vld [vmem:[#allocation9_spill] sm:$0xff]  ;;  %v3146_v11 = vld [vmem:[#allocation16_spill] sm:$0xff] }
 0x17d   : > { %v1136_v13 = vmul.f32 %v1084_v3, %v2753_v15  ;;  %v1083_v23 = vadd.f32 1.0, %v2050_v58  ;;  %v807_v52 = vmul.f32 0.044715, %v2803_v63  ;;  %v806_v46 = vmul.f32 0.044715, %v2808_v53  ;;  %v3144_v15 = vld [vmem:[#allocation14_spill] sm:$0xff] }
 0x17e   : > { %1328 = vmatprep.mubr.f32.mxu0 %v1134_v57  ;;  %v1133_v61 = vmul.f32 %v1081_v60, %v717_v32  ;;  %v934_v33 = vadd.f32 %v882_v29, %v2501_v40  ;;  %v884_v36 = vmul.f32 %v3142_v35, %v3141_v54  ;;  %v723_v37 = vmul.f32 0.5, %v2474_v17  ;;  %v3145_v3 = vld [vmem:[#allocation10_spill] sm:$0xff] }
 0x17f   : > { %1458 = vmatprep.mubr.f32.mxu1 %v1136_v13  ;;  %v1135_v38 = vmul.f32 %v1083_v23, %v719_v51  ;;  %v881_v31 = vmul.f32 %v3144_v15, %v3143_v9  ;;  %v883_v58 = vmul.f32 %v3146_v11, %v3145_v3  ;;  %v2834_v32 = vmul.f32 %v805_v20, %v2792_v7 }
 0x180   : > { %1329 = vmatmul.mubr.f32.gmra.mrb[30].mxu0 %v1133_v61  ;;  %v808_v57 = vmul.f32 0.044715, %v2817_v21  ;;  %v986_v60 = vmul.f32 0.7978846, %v934_v33  ;;  %v936_v29 = vadd.f32 %v884_v36, %v3141_v54  ;;  %v2839_v51 = vmul.f32 %v807_v52, %v2803_v63 }
 0x181   : > { %1459 = vmatmul.mubr.f32.gmra.mrb[30].mxu1 %v1135_v38  ;;  %v933_v17 = vadd.f32 %v881_v31, %v3143_v9  ;;  %v935_v13 = vadd.f32 %v883_v58, %v3145_v3  ;;  %v2845_v23 = vadd.f32 %v2733_v42, %v2415_v22  ;;  %v2848_v20 = vmul.f32 %v806_v46, %v2808_v53 }
 0x182   : > { %v2052_v61 = vpop.eup %2051  ;;  %2059 = vtanh.f32 %v986_v60  ;;  %v988_v33 = vmul.f32 0.7978846, %v936_v29  ;;  %v2852_v35 = vadd.f32 %v2748_v39, %v2417_v24  ;;  %v726_v38 = vmul.f32 0.5, %v2501_v40 }
 0x183   : > { %v2054_v52 = vpop.eup %2053  ;;  %v1086_v36 = vadd.f32 1.0, %v2052_v61  ;;  %v985_v15 = vmul.f32 0.7978846, %v933_v17  ;;  %v987_v31 = vmul.f32 0.7978846, %v935_v13  ;;  %v2856_v22 = vmul.f32 %v808_v57, %v2817_v21 }
 0x184   : > { %3147 = vst [vmem:[#allocation11_spill] sm:$0xff] %v2852_v35  ;;  %v2056_v11 = vpop.eup %2055  ;;  %v1088_v58 = vadd.f32 1.0, %v2054_v52  ;;  %v728_v42 = vmul.f32 0.5, %v3141_v54  ;;  %2061 = vtanh.f32 %v988_v33  ;;  %v809_v24 = vmul.f32 0.044715, %v2845_v23  ;;  %v3149_v52 = vld [vmem:[#allocation19_spill] sm:$0xff] }
 0x185   : > { %v2058_v46 = vpop.eup %2057  ;;  %v1138_v60 = vmul.f32 %v1086_v36, %v722_v18  ;;  %v1085_v29 = vadd.f32 1.0, %v2056_v11  ;;  %2063 = vtanh.f32 %v985_v15  ;;  %v811_v40 = vmul.f32 0.044715, %v2852_v35  ;;  %v3150_v36 = vld [vmem:[#allocation13_spill] sm:$0xff]  ;;  %v3151_v15 = vld [vmem:[#allocation23_spill] sm:$0xff] }
 0x186   : > { %v1140_v39 = vmul.f32 %v1088_v58, %v724_v26  ;;  %v1087_v61 = vadd.f32 1.0, %v2058_v46  ;;  %2065 = vtanh.f32 %v987_v31  ;;  %v725_v13 = vmul.f32 0.5, %v3143_v9 }
 0x187   : > { %1333 = vmatprep.mubr.f32.mxu0 %v1138_v60  ;;  %v1137_v17 = vmul.f32 %v1085_v29, %v721_v2  ;;  %v727_v57 = vmul.f32 0.5, %v3145_v3  ;;  %v886_v54 = vmul.f32 %v2604_v6, %v2545_v10  ;;  %v2867_v33 = vadd.f32 %v2750_v0, %v2419_v25  ;;  %v3148_v6 = vld [vmem:[#allocation12_spill] sm:$0xff] }
 0x188   : > { %1463 = vmatprep.mubr.f32.mxu1 %v1140_v39  ;;  %v1139_v18 = vmul.f32 %v1087_v61, %v723_v37  ;;  %v2871_v26 = vadd.f32 %v2758_v59, %v2422_v30  ;;  %v888_v2 = vmul.f32 %v2614_v49, %v2550_v14  ;;  %v2876_v9 = vmul.f32 0.5, %v2545_v10  ;;  %v3153_v39 = vld [vmem:[#allocation15_spill] sm:$0xff]  ;;  %v3154_v61 = vld [vmem:[#allocation24_spill] sm:$0xff] }
 0x189   : > { %1334 = vmatmul.mubr.f32.gmra.mrb[32].mxu0 %v1137_v17  ;;  %v938_v3 = vadd.f32 %v886_v54, %v2545_v10  ;;  %v885_v37 = vmul.f32 %v3149_v52, %v3148_v6  ;;  %v887_v25 = vmul.f32 %v3151_v15, %v3150_v36  ;;  %v2884_v0 = vmul.f32 %v809_v24, %v2845_v23 }
 0x18a   : > { %1464 = vmatmul.mubr.f32.gmra.mrb[32].mxu1 %v1139_v18  ;;  %v2887_v30 = vmul.f32 %v811_v40, %v2852_v35  ;;  %v940_v49 = vadd.f32 %v888_v2, %v2550_v14  ;;  %v890_v59 = vmul.f32 %v2624_v19, %v2573_v41  ;;  %v892_v58 = vmul.f32 %v2631_v16, %v2578_v55 }
 0x18b   : > { %v990_v31 = vmul.f32 0.7978846, %v938_v3  ;;  %v937_v10 = vadd.f32 %v885_v37, %v3148_v6  ;;  %v939_v11 = vadd.f32 %v887_v25, %v3150_v36  ;;  %v810_v60 = vmul.f32 0.044715, %v2867_v33 }
 0x18c   : > { %3152 = vst [vmem:[#allocation18_spill] sm:$0xff] %v2887_v30  ;;  %v2060_v46 = vpop.eup %2059  ;;  %v992_v29 = vmul.f32 0.7978846, %v940_v49  ;;  %v942_v24 = vadd.f32 %v890_v59, %v2573_v41  ;;  %v889_v40 = vmul.f32 %v3154_v61, %v3153_v39  ;;  %v944_v3 = vadd.f32 %v892_v58, %v2578_v55  ;;  %v3156_v58 = vld [vmem:[#allocation25_spill] sm:$0xff] }
 0x18d   : > { %v1090_v17 = vadd.f32 1.0, %v2060_v46  ;;  %2067 = vtanh.f32 %v990_v31  ;;  %v989_v19 = vmul.f32 0.7978846, %v937_v10  ;;  %v991_v54 = vmul.f32 0.7978846, %v939_v11 }
 0x18e   : > { %v2062_v18 = vpop.eup %2061  ;;  %2069 = vtanh.f32 %v992_v29  ;;  %v994_v2 = vmul.f32 0.7978846, %v942_v24  ;;  %v941_v16 = vadd.f32 %v889_v40, %v3153_v39  ;;  %v2903_v25 = vmul.f32 0.044715, %v2871_v26  ;;  %v3155_v29 = vld [vmem:[#allocation17_spill] sm:$0xff]  ;;  %v3157_v40 = vld [vmem:[#allocation22_spill] sm:$0xff] }
 0x18f   : > { %v2064_v52 = vpop.eup %2063  ;;  %v1142_v37 = vmul.f32 %v1090_v17, %v726_v38  ;;  %v1092_v15 = vadd.f32 1.0, %v2062_v18  ;;  %2071 = vtanh.f32 %v989_v19  ;;  %v996_v31 = vmul.f32 0.7978846, %v944_v3  ;;  %v3158_v17 = vld [vmem:[#allocation31_spill] sm:$0xff] }
 0x190   : > { %v2066_v49 = vpop.eup %2065  ;;  %v1089_v59 = vadd.f32 1.0, %v2064_v52  ;;  %2073 = vtanh.f32 %v991_v54  ;;  %v993_v10 = vmul.f32 0.7978846, %v941_v16  ;;  %v891_v24 = vmul.f32 %v3156_v58, %v3155_v29  ;;  %v3160_v16 = vld [vmem:[#allocation29_spill] sm:$0xff] }
 0x191   : > { %1338 = vmatprep.mubr.f32.mxu0 %v1142_v37  ;;  %v1144_v11 = vmul.f32 %v1092_v15, %v728_v42  ;;  %v1091_v46 = vadd.f32 1.0, %v2066_v49  ;;  %2075 = vtanh.f32 %v994_v2  ;;  %v2908_v38 = vmul.f32 %v810_v60, %v2867_v33  ;;  %v3159_v60 = vld [vmem:[#allocation20_spill] sm:$0xff]  ;;  %v3161_v15 = vld [vmem:[#allocation21_spill] sm:$0xff]  ;;  %v3162_v49 = vld [vmem:[#allocation30_spill] sm:$0xff] }
 0x192   : > { %v1141_v61 = vmul.f32 %v1089_v59, %v725_v13  ;;  %2077 = vtanh.f32 %v996_v31  ;;  %v894_v19 = vmul.f32 %v3158_v17, %v3157_v40  ;;  %v732_v54 = vmul.f32 0.5, %v2550_v14 }
 0x193   : > { %1468 = vmatprep.mubr.f32.mxu1 %v1144_v11  ;;  %v1143_v18 = vmul.f32 %v1091_v46, %v727_v57  ;;  %2079 = vtanh.f32 %v993_v10  ;;  %v943_v42 = vadd.f32 %v891_v24, %v3155_v29  ;;  %v729_v2 = vmul.f32 0.5, %v3148_v6  ;;  %v3163_v11 = vld [vmem:[#allocation35_spill] sm:$0xff]  ;;  %v3164_v24 = vld [vmem:[#allocation28_spill] sm:$0xff] }
 0x194   : > { %1339 = vmatmul.mubr.f32.gmra.mrb[34].mxu0 %v1141_v61  ;;  %v946_v3 = vadd.f32 %v894_v19, %v3157_v40  ;;  %v896_v13 = vmul.f32 %v2668_v45, %v2610_v34  ;;  %v893_v52 = vmul.f32 %v3160_v16, %v3159_v60  ;;  %v731_v37 = vmul.f32 0.5, %v3150_v36 }
 0x195   : > { %1469 = vmatmul.mubr.f32.gmra.mrb[34].mxu1 %v1143_v18  ;;  %v734_v57 = vmul.f32 0.5, %v2573_v41  ;;  %v995_v14 = vmul.f32 0.7978846, %v943_v42  ;;  %v895_v59 = vmul.f32 %v3162_v49, %v3161_v15  ;;  %v898_v45 = vmul.f32 %v3163_v11, %v2637_v12  ;;  %v3165_v41 = vld [vmem:[#allocation36_spill] sm:$0xff] }
 0x196   : > { %v998_v31 = vmul.f32 0.7978846, %v946_v3  ;;  %v948_v6 = vadd.f32 %v896_v13, %v2610_v34  ;;  %v945_v10 = vadd.f32 %v893_v52, %v3159_v60  ;;  %v736_v58 = vmul.f32 0.5, %v2578_v55 }
 0x197   : > { %v2068_v46 = vpop.eup %2067  ;;  %2081 = vtanh.f32 %v995_v14  ;;  %v947_v36 = vadd.f32 %v895_v59, %v3161_v15  ;;  %v900_v61 = vmul.f32 %v3165_v41, %v3164_v24  ;;  %v950_v52 = vadd.f32 %v898_v45, %v2637_v12 }
 0x198   : > { %v2070_v17 = vpop.eup %2069  ;;  %v1094_v19 = vadd.f32 1.0, %v2068_v46  ;;  %2083 = vtanh.f32 %v998_v31  ;;  %v1000_v18 = vmul.f32 0.7978846, %v948_v6  ;;  %v997_v42 = vmul.f32 0.7978846, %v945_v10 }
 0x199   : > { %v2072_v3 = vpop.eup %2071  ;;  %v1096_v13 = vadd.f32 1.0, %v2070_v17  ;;  %v999_v16 = vmul.f32 0.7978846, %v947_v36  ;;  %v952_v49 = vadd.f32 %v900_v61, %v3164_v24  ;;  %v733_v59 = vmul.f32 0.5, %v3153_v39 }
 0x19a   : > { %v2074_v11 = vpop.eup %2073  ;;  %v1146_v55 = vmul.f32 %v1094_v19, %v2876_v9  ;;  %v1093_v14 = vadd.f32 1.0, %v2072_v3  ;;  %2085 = vtanh.f32 %v1000_v18  ;;  %v1002_v31 = vmul.f32 0.7978846, %v950_v52  ;;  %v3166_v9 = vld [vmem:[#allocation26_spill] sm:$0xff]  ;;  %v3167_v19 = vld [vmem:[#allocation33_spill] sm:$0xff] }
 0x19b   : > { %v2076_v41 = vpop.eup %2075  ;;  %v1148_v30 = vmul.f32 %v1096_v13, %v732_v54  ;;  %v1095_v46 = vadd.f32 1.0, %v2074_v11  ;;  %2087 = vtanh.f32 %v997_v42  ;;  %v1004_v45 = vmul.f32 0.7978846, %v952_v49 }
 0x19c   : > { %v2078_v6 = vpop.eup %2077  ;;  %1343 = vmatprep.mubr.f32.mxu0 %v1146_v55  ;;  %v1145_v10 = vmul.f32 %v1093_v14, %v729_v2  ;;  %v1098_v36 = vadd.f32 1.0, %v2076_v41  ;;  %2089 = vtanh.f32 %v999_v16  ;;  %v897_v39 = vmul.f32 %v3167_v19, %v3166_v9  ;;  %v3168_v16 = vld [vmem:[#allocation27_spill] sm:$0xff]  ;;  %v3170_v55 = vld [vmem:[#allocation37_spill] sm:$0xff] }
 0x19d   : > { %v2080_v17 = vpop.eup %2079  ;;  %1473 = vmatprep.mubr.f32.mxu1 %v1148_v30  ;;  %v1147_v61 = vmul.f32 %v1095_v46, %v731_v37  ;;  %v1100_v35 = vadd.f32 1.0, %v2078_v6  ;;  %2091 = vtanh.f32 %v1002_v31  ;;  %v735_v42 = vmul.f32 0.5, %v3155_v29  ;;  %v3169_v30 = vld [vmem:[#allocation34_spill] sm:$0xff] }
 0x19e   : > { %1344 = vmatmul.mubr.f32.gmra.mrb[36].mxu0 %v1145_v10  ;;  %v1150_v18 = vmul.f32 %v1098_v36, %v734_v57  ;;  %v1097_v54 = vadd.f32 1.0, %v2080_v17  ;;  %2093 = vtanh.f32 %v1004_v45  ;;  %v738_v2 = vmul.f32 0.5, %v3157_v40  ;;  %v3171_v17 = vld [vmem:[#allocation32_spill] sm:$0xff] }
 0x19f   : > { %1474 = vmatmul.mubr.f32.gmra.mrb[36].mxu1 %v1147_v61  ;;  %v1152_v3 = vmul.f32 %v1100_v35, %v736_v58  ;;  %v949_v13 = vadd.f32 %v897_v39, %v3166_v9  ;;  %v899_v37 = vmul.f32 %v3169_v30, %v3168_v16  ;;  %v740_v49 = vmul.f32 0.5, %v2610_v34  ;;  %v3172_v61 = vld [vmem:[#allocation38_spill] sm:$0xff] }
 0x1a0   : > { %1348 = vmatprep.mubr.f32.mxu0 %v1150_v18  ;;  %v1149_v52 = vmul.f32 %v1097_v54, %v733_v59  ;;  %v902_v57 = vmul.f32 %v2743_v43, %v2686_v27  ;;  %v904_v29 = vmul.f32 %v2761_v4, %v2692_v56  ;;  %v737_v35 = vmul.f32 0.5, %v3159_v60 }
 0x1a1   : > { %v2082_v11 = vpop.eup %2081  ;;  %1478 = vmatprep.mubr.f32.mxu1 %v1152_v3  ;;  %v1001_v40 = vmul.f32 0.7978846, %v949_v13  ;;  %v951_v58 = vadd.f32 %v899_v37, %v3168_v16  ;;  %v901_v14 = vmul.f32 %v3170_v55, %v2674_v50  ;;  %v739_v34 = vmul.f32 0.5, %v3161_v15 }
 0x1a2   : > { %v2084_v41 = vpop.eup %2083  ;;  %1349 = vmatmul.mubr.f32.gmra.mrb[38].mxu0 %v1149_v52  ;;  %v1099_v59 = vadd.f32 1.0, %v2082_v11  ;;  %v954_v43 = vadd.f32 %v902_v57, %v2686_v27  ;;  %v956_v46 = vadd.f32 %v904_v29, %v2692_v56  ;;  %v903_v19 = vmul.f32 %v3172_v61, %v3171_v17 }
 0x1a3   : > { %v1102_v4 = vadd.f32 1.0, %v2084_v41  ;;  %2095 = vtanh.f32 %v1001_v40  ;;  %v1003_v31 = vmul.f32 0.7978846, %v951_v58  ;;  %v953_v60 = vadd.f32 %v901_v14, %v2674_v50 }
 0x1a4   : > { %v2086_v6 = vpop.eup %2085  ;;  %v1151_v10 = vmul.f32 %v1099_v59, %v735_v42  ;;  %v1006_v36 = vmul.f32 0.7978846, %v954_v43  ;;  %v1008_v45 = vmul.f32 0.7978846, %v956_v46  ;;  %v742_v30 = vmul.f32 0.5, %v2637_v12 }
 0x1a5   : > { %v2088_v39 = vpop.eup %2087  ;;  %v1154_v18 = vmul.f32 %v1102_v4, %v738_v2  ;;  %v1104_v54 = vadd.f32 1.0, %v2086_v6  ;;  %2097 = vtanh.f32 %v1003_v31  ;;  %v1005_v15 = vmul.f32 0.7978846, %v953_v60 }
 0x1a6   : > { %v2090_v3 = vpop.eup %2089  ;;  %1479 = vmatmul.mubr.f32.gmra.mrb[38].mxu1 %v1151_v10  ;;  %v1101_v13 = vadd.f32 1.0, %v2088_v39  ;;  %2099 = vtanh.f32 %v1006_v36  ;;  %v955_v37 = vadd.f32 %v903_v19, %v3171_v17  ;;  %v906_v29 = vmul.f32 %v2798_v1, %v2756_v28 }
 0x1a7   : > { %v2092_v52 = vpop.eup %2091  ;;  %1353 = vmatprep.mubr.f32.mxu0 %v1154_v18  ;;  %v1156_v42 = vmul.f32 %v1104_v54, %v740_v49  ;;  %v1103_v57 = vadd.f32 1.0, %v2090_v3  ;;  %2101 = vtanh.f32 %v1008_v45  ;;  %v744_v12 = vmul.f32 0.5, %v3164_v24 }
 0x1a8   : > { %v2094_v2 = vpop.eup %2093  ;;  %v1153_v11 = vmul.f32 %v1101_v13, %v737_v35  ;;  %v1106_v40 = vadd.f32 1.0, %v2092_v52  ;;  %2103 = vtanh.f32 %v1005_v15  ;;  %v1007_v58 = vmul.f32 0.7978846, %v955_v37 }
 0x1a9   : > { %1483 = vmatprep.mubr.f32.mxu1 %v1156_v42  ;;  %v1155_v55 = vmul.f32 %v1103_v57, %v739_v34  ;;  %v1108_v14 = vadd.f32 1.0, %v2094_v2  ;;  %v958_v41 = vadd.f32 %v906_v29, %v2756_v28  ;;  %v2966_v49 = vmul.f32 %v2903_v25, %v2871_v26 }
 0x1aa   : > { %1354 = vmatmul.mubr.f32.gmra.mrb[40].mxu0 %v1153_v11  ;;  %v1158_v59 = vmul.f32 %v1106_v40, %v742_v30  ;;  %2105 = vtanh.f32 %v1007_v58  ;;  %v908_v1 = vmul.f32 %v2811_v47, %v2766_v5  ;;  %v741_v43 = vmul.f32 0.5, %v3166_v9 }
 0x1ab   : > { %1484 = vmatmul.mubr.f32.gmra.mrb[40].mxu1 %v1155_v55  ;;  %v1160_v35 = vmul.f32 %v1108_v14, %v744_v12  ;;  %v1010_v34 = vmul.f32 0.7978846, %v958_v41  ;;  %v905_v24 = vmul.f32 %v2784_v8, %v2731_v44  ;;  %v743_v46 = vmul.f32 0.5, %v3168_v16 }
 0x1ac   : > { %1358 = vmatprep.mubr.f32.mxu0 %v1158_v59  ;;  %v960_v25 = vadd.f32 %v908_v1, %v2766_v5  ;;  %v907_v4 = vmul.f32 %v2795_v62, %v2746_v48  ;;  %v910_v31 = vmul.f32 %v2848_v20, %v2808_v53  ;;  %v746_v60 = vmul.f32 0.5, %v2686_v27 }
 0x1ad   : > { %v2096_v47 = vpop.eup %2095  ;;  %1488 = vmatprep.mubr.f32.mxu1 %v1160_v35  ;;  %2107 = vtanh.f32 %v1010_v34  ;;  %v957_v9 = vadd.f32 %v905_v24, %v2731_v44  ;;  %v912_v8 = vmul.f32 %v2856_v22, %v2817_v21  ;;  %v748_v45 = vmul.f32 0.5, %v2692_v56 }
 0x1ae   : > { %v1105_v6 = vadd.f32 1.0, %v2096_v47  ;;  %v1012_v16 = vmul.f32 0.7978846, %v960_v25  ;;  %v959_v10 = vadd.f32 %v907_v4, %v2746_v48  ;;  %v962_v36 = vadd.f32 %v910_v31, %v2808_v53  ;;  %v3173_v25 = vld [vmem:[#allocation11_spill] sm:$0xff] }
 0x1af   : > { %v2098_v62 = vpop.eup %2097  ;;  %v1009_v20 = vmul.f32 0.7978846, %v957_v9  ;;  %v964_v61 = vadd.f32 %v912_v8, %v2817_v21  ;;  %v909_v27 = vmul.f32 %v2834_v32, %v2792_v7  ;;  %v745_v32 = vmul.f32 0.5, %v2674_v50 }
 0x1b0   : > { %v2100_v19 = vpop.eup %2099  ;;  %v1157_v39 = vmul.f32 %v1105_v6, %v741_v43  ;;  %v1107_v18 = vadd.f32 1.0, %v2098_v62  ;;  %2109 = vtanh.f32 %v1012_v16  ;;  %v1011_v22 = vmul.f32 0.7978846, %v959_v10 }
 0x1b1   : > { %v2102_v54 = vpop.eup %2101  ;;  %v1110_v15 = vadd.f32 1.0, %v2100_v19  ;;  %2111 = vtanh.f32 %v1009_v20  ;;  %v1014_v3 = vmul.f32 0.7978846, %v962_v36  ;;  %v1016_v13 = vmul.f32 0.7978846, %v964_v61 }
 0x1b2   : > { %v2104_v30 = vpop.eup %2103  ;;  %1359 = vmatmul.mubr.f32.gmra.mrb[42].mxu0 %v1157_v39  ;;  %v1159_v37 = vmul.f32 %v1107_v18, %v743_v46  ;;  %v1112_v56 = vadd.f32 1.0, %v2102_v54  ;;  %2113 = vtanh.f32 %v1011_v22  ;;  %v961_v52 = vadd.f32 %v909_v27, %v2792_v7 }
 0x1b3   : > { %v1162_v42 = vmul.f32 %v1110_v15, %v746_v60  ;;  %v1109_v57 = vadd.f32 1.0, %v2104_v30  ;;  %2115 = vtanh.f32 %v1014_v3  ;;  %v911_v40 = vmul.f32 %v2839_v51, %v2803_v63 }
 0x1b4   : > { %v2106_v29 = vpop.eup %2105  ;;  %1489 = vmatmul.mubr.f32.gmra.mrb[42].mxu1 %v1159_v37  ;;  %v1164_v2 = vmul.f32 %v1112_v56, %v748_v45  ;;  %2117 = vtanh.f32 %v1016_v13  ;;  %v1013_v11 = vmul.f32 0.7978846, %v961_v52  ;;  %v747_v55 = vmul.f32 0.5, %v3171_v17 }
 0x1b5   : > { %1363 = vmatprep.mubr.f32.mxu0 %v1162_v42  ;;  %v1161_v58 = vmul.f32 %v1109_v57, %v745_v32  ;;  %v1111_v12 = vadd.f32 1.0, %v2106_v29  ;;  %v914_v14 = vmul.f32 %v2908_v38, %v2867_v33  ;;  %v963_v50 = vadd.f32 %v911_v40, %v2803_v63 }
 0x1b6   : > { %1493 = vmatprep.mubr.f32.mxu1 %v1164_v2  ;;  %2119 = vtanh.f32 %v1013_v11  ;;  %v916_v41 = vmul.f32 %v2966_v49, %v2871_v26  ;;  %v913_v35 = vmul.f32 %v2884_v0, %v2845_v23  ;;  %v750_v17 = vmul.f32 0.5, %v2756_v28  ;;  %v3174_v49 = vld [vmem:[#allocation18_spill] sm:$0xff] }
 0x1b7   : > { %v2108_v59 = vpop.eup %2107  ;;  %1364 = vmatmul.mubr.f32.gmra.mrb[44].mxu0 %v1161_v58  ;;  %v1163_v1 = vmul.f32 %v1111_v12, %v747_v55  ;;  %v966_v51 = vadd.f32 %v914_v14, %v2867_v33  ;;  %v1015_v34 = vmul.f32 0.7978846, %v963_v50  ;;  %v915_v4 = vmul.f32 %v3174_v49, %v3173_v25 }
 0x1b8   : > { %v1114_v43 = vadd.f32 1.0, %v2108_v59  ;;  %v968_v38 = vadd.f32 %v916_v41, %v2871_v26  ;;  %v965_v46 = vadd.f32 %v913_v35, %v2845_v23  ;;  %v752_v60 = vmul.f32 0.5, %v2766_v5 }
 0x1b9   : > { %1494 = vmatmul.mubr.f32.gmra.mrb[44].mxu1 %v1163_v1  ;;  %v1018_v24 = vmul.f32 0.7978846, %v966_v51  ;;  %2121 = vtanh.f32 %v1015_v34  ;;  %v967_v6 = vadd.f32 %v915_v4, %v3173_v25  ;;  %v749_v10 = vmul.f32 0.5, %v2731_v44 }
 0x1ba   : > { %v2110_v31 = vpop.eup %2109  ;;  %v1166_v47 = vmul.f32 %v1114_v43, %v750_v17  ;;  %v1020_v9 = vmul.f32 0.7978846, %v968_v38  ;;  %v1017_v28 = vmul.f32 0.7978846, %v965_v46  ;;  %v751_v62 = vmul.f32 0.5, %v2746_v48 }
 0x1bb   : > { %v2112_v0 = vpop.eup %2111  ;;  %v1116_v8 = vadd.f32 1.0, %v2110_v31  ;;  %2123 = vtanh.f32 %v1018_v24  ;;  %v1019_v5 = vmul.f32 0.7978846, %v967_v6  ;;  %v754_v39 = vmul.f32 0.5, %v2808_v53  ;;  %v3022_v17 = vld [vmem:[%s3070_s4] ss:$0 sm:$0xff] }
 0x1bc   : > { %v2114_v16 = vpop.eup %2113  ;;  %1368 = vmatprep.mubr.f32.mxu0 %v1166_v47  ;;  %v1113_v36 = vadd.f32 1.0, %v2112_v0  ;;  %2125 = vtanh.f32 %v1020_v9  ;;  %v756_v54 = vmul.f32 0.5, %v2817_v21  ;;  %v753_v13 = vmul.f32 0.5, %v2792_v7 }
 0x1bd   : > { %v2116_v45 = vpop.eup %2115  ;;  %v1168_v20 = vmul.f32 %v1116_v8, %v752_v60  ;;  %v1115_v61 = vadd.f32 1.0, %v2114_v16  ;;  %2127 = vtanh.f32 %v1017_v28  ;;  %v755_v52 = vmul.f32 0.5, %v2803_v63 }
 0x1be   : > { %v2118_v27 = vpop.eup %2117  ;;  %v1165_v19 = vmul.f32 %v1113_v36, %v749_v10  ;;  %v1118_v18 = vadd.f32 1.0, %v2116_v45  ;;  %2129 = vtanh.f32 %v1019_v5  ;;  %v758_v32 = vmul.f32 0.5, %v2867_v33 }
 0x1bf   : > { %1498 = vmatprep.mubr.f32.mxu1 %v1168_v20  ;;  %v1167_v22 = vmul.f32 %v1115_v61, %v751_v62  ;;  %v1120_v15 = vadd.f32 1.0, %v2118_v27  ;;  %v760_v11 = vmul.f32 0.5, %v2871_v26  ;;  %v757_v58 = vmul.f32 0.5, %v2845_v23 }
 0x1c0   : > { %v2120_v44 = vpop.eup %2119  ;;  %1369 = vmatmul.mubr.f32.gmra.mrb[46].mxu0 %v1165_v19  ;;  %v1170_v48 = vmul.f32 %v1118_v18, %v754_v39  ;;  %v759_v50 = vmul.f32 0.5, %v3173_v25 }
 0x1c1   : > { %1499 = vmatmul.mubr.f32.gmra.mrb[46].mxu1 %v1167_v22  ;;  %v1172_v3 = vmul.f32 %v1120_v15, %v756_v54  ;;  %v1117_v30 = vadd.f32 1.0, %v2120_v44 }
 0x1c2   : > { %1373 = vmatprep.mubr.f32.mxu0 %v1170_v48 }
 0x1c3   : > { %1503 = vmatprep.mubr.f32.mxu1 %v1172_v3  ;;  %v1169_v37 = vmul.f32 %v1117_v30, %v753_v13  ;;  %v2122_v56 = vpop.eup %2121 }
 0x1c4   : > { %v1119_v42 = vadd.f32 1.0, %v2122_v56 }
 0x1c5   : > { %v2124_v53 = vpop.eup %2123  ;;  %1374 = vmatmul.mubr.f32.gmra.mrb[48].mxu0 %v1169_v37 }
 0x1c6   : > { %v2126_v21 = vpop.eup %2125  ;;  %v1122_v57 = vadd.f32 1.0, %v2124_v53  ;;  %v1171_v2 = vmul.f32 %v1119_v42, %v755_v52 }
 0x1c7   : > { %v2128_v29 = vpop.eup %2127  ;;  %v1124_v40 = vadd.f32 1.0, %v2126_v21 }
 0x1c8   : > { %v1174_v7 = vmul.f32 %v1122_v57, %v758_v32  ;;  %v1121_v55 = vadd.f32 1.0, %v2128_v29  ;;  %v2130_v12 = vpop.eup %2129  ;;  %1504 = vmatmul.mubr.f32.gmra.mrb[48].mxu1 %v1171_v2 }
 0x1c9   : > { %v1176_v14 = vmul.f32 %v1124_v40, %v760_v11  ;;  %v1123_v41 = vadd.f32 1.0, %v2130_v12 }
 0x1ca   : > { %1378 = vmatprep.mubr.f32.mxu0 %v1174_v7  ;;  %v1173_v63 = vmul.f32 %v1121_v55, %v757_v58 }
 0x1cb   : > { %1508 = vmatprep.mubr.f32.mxu1 %v1176_v14  ;;  %v1175_v33 = vmul.f32 %v1123_v41, %v759_v50 }
 0x1cc   : > { %1379 = vmatmul.mubr.f32.gmra.mrb[50].mxu0 %v1173_v63 }
 0x1cd   : > { %1509 = vmatmul.mubr.f32.gmra.mrb[50].mxu1 %v1175_v33 }
 0x231   : > { %v1739_v59 = vpop.f32.mrb[26].mxu0 }
 0x232   : > { %v1740_v26 = vpop.f32.mrb[27].mxu0 }
 0x233   : > { %v1741_v1 = vadd.f32 %v1740_v26, %v1739_v59 }
 0x23b   : > { %v1810_v51 = vpop.f32.mrb[26].mxu1 }
 0x23c   : > { %v1811_v35 = vpop.f32.mrb[27].mxu1 }
 0x23d   : > { %v1812_v23 = vadd.f32 %v1811_v35, %v1810_v51 }
 0x23f   : > { %v1451_v43 = vadd.f32 %v1812_v23, %v1741_v1 }
 0x241   : > { %v1563_v34 = vadd.f32 %v3022_v17, %v1451_v43 }
 0x243   : > { %1576 = vst [vmem:[%s3029_s25] sm:$0xff] %v1563_v34 }
 0x24b   : > { %v1742_v38 = vpop.f32.mrb[28].mxu0 }
 0x24c   : > { %v1743_v24 = vpop.f32.mrb[29].mxu0  ;;  %v1813_v46 = vpop.f32.mrb[28].mxu1 }
 0x24d   : > { %v1744_v25 = vadd.f32 %v1743_v24, %v1742_v38  ;;  %v1814_v49 = vpop.f32.mrb[29].mxu1 }
 0x24e   : > { %v1815_v4 = vadd.f32 %v1814_v49, %v1813_v46 }
 0x250   : > { %v1456_v31 = vadd.f32 %v1815_v4, %v1744_v25 }
 0x252   : > { %v1564_v47 = vadd.f32 %v3022_v17, %v1456_v31 }
 0x253   : > { %v1745_v60 = vpop.f32.mrb[30].mxu0 }
 0x254   : > { %1577 = vst [vmem:[%s3029_s25 + $0x8] sm:$0xff] %v1564_v47  ;;  %v1816_v9 = vpop.f32.mrb[30].mxu1  ;;  %v1746_v0 = vpop.f32.mrb[31].mxu0 }
 0x255   : > { %v1747_v8 = vadd.f32 %v1746_v0, %v1745_v60  ;;  %v1817_v28 = vpop.f32.mrb[31].mxu1 }
 0x256   : > { %v1818_v6 = vadd.f32 %v1817_v28, %v1816_v9 }
 0x258   : > { %v1461_v16 = vadd.f32 %v1818_v6, %v1747_v8 }
 0x25a   : > { %v1565_v10 = vadd.f32 %v3022_v17, %v1461_v16 }
 0x25c   : > { %1578 = vst [vmem:[%s3029_s25 + $0x10] sm:$0xff] %v1565_v10  ;;  %v1748_v36 = vpop.f32.mrb[32].mxu0 }
 0x25d   : > { %v1819_v62 = vpop.f32.mrb[32].mxu1  ;;  %v1749_v45 = vpop.f32.mrb[33].mxu0 }
 0x25e   : > { %v1750_v20 = vadd.f32 %v1749_v45, %v1748_v36  ;;  %v1820_v61 = vpop.f32.mrb[33].mxu1 }
 0x25f   : > { %v1821_v5 = vadd.f32 %v1820_v61, %v1819_v62 }
 0x261   : > { %v1466_v27 = vadd.f32 %v1821_v5, %v1750_v20 }
 0x263   : > { %v1566_v19 = vadd.f32 %v3022_v17, %v1466_v27 }
 0x265   : > { %1579 = vst [vmem:[%s3029_s25 + $0x18] sm:$0xff] %v1566_v19 }
 0x267   : > { %v1751_v39 = vpop.f32.mrb[34].mxu0 }
 0x268   : > { %v1822_v18 = vpop.f32.mrb[34].mxu1  ;;  %v1752_v22 = vpop.f32.mrb[35].mxu0 }
 0x269   : > { %v1753_v54 = vadd.f32 %v1752_v22, %v1751_v39  ;;  %v1823_v15 = vpop.f32.mrb[35].mxu1 }
 0x26a   : > { %v1824_v44 = vadd.f32 %v1823_v15, %v1822_v18 }
 0x26c   : > { %v1471_v48 = vadd.f32 %v1824_v44, %v1753_v54 }
 0x26e   : > { %v1567_v3 = vadd.f32 %v3022_v17, %v1471_v48 }
 0x270   : > { %1580 = vst [vmem:[%s3029_s25 + $0x20] sm:$0xff] %v1567_v3 }
 0x271   : > { %v1754_v13 = vpop.f32.mrb[36].mxu0 }
 0x272   : > { %v1825_v30 = vpop.f32.mrb[36].mxu1  ;;  %v1755_v37 = vpop.f32.mrb[37].mxu0 }
 0x273   : > { %v1756_v56 = vadd.f32 %v1755_v37, %v1754_v13  ;;  %v1826_v53 = vpop.f32.mrb[37].mxu1 }
 0x274   : > { %v1827_v52 = vadd.f32 %v1826_v53, %v1825_v30 }
 0x275   : > { %v1757_v42 = vpop.f32.mrb[38].mxu0 }
 0x276   : > { %v1476_v21 = vadd.f32 %v1827_v52, %v1756_v56  ;;  %v1758_v32 = vpop.f32.mrb[39].mxu0 }
 0x277   : > { %v1759_v57 = vadd.f32 %v1758_v32, %v1757_v42 }
 0x278   : > { %v1568_v29 = vadd.f32 %v3022_v17, %v1476_v21 }
 0x279   : > { %v1828_v2 = vpop.f32.mrb[38].mxu1 }
 0x27a   : > { %1581 = vst [vmem:[%s3029_s25 + $0x28] sm:$0xff] %v1568_v29  ;;  %v1829_v11 = vpop.f32.mrb[39].mxu1 }
 0x27b   : > { %v1830_v40 = vadd.f32 %v1829_v11, %v1828_v2 }
 0x27d   : > { %v1481_v7 = vadd.f32 %v1830_v40, %v1759_v57  ;;  %v1760_v58 = vpop.f32.mrb[40].mxu0 }
 0x27e   : > { %v1831_v55 = vpop.f32.mrb[40].mxu1  ;;  %v1761_v12 = vpop.f32.mrb[41].mxu0 }
 0x27f   : > { %v1569_v14 = vadd.f32 %v3022_v17, %v1481_v7  ;;  %v1762_v63 = vadd.f32 %v1761_v12, %v1760_v58  ;;  %v1832_v50 = vpop.f32.mrb[41].mxu1 }
 0x280   : > { %v1833_v41 = vadd.f32 %v1832_v50, %v1831_v55 }
 0x281   : > { %1582 = vst [vmem:[%s3029_s25 + $0x30] sm:$0xff] %v1569_v14 }
 0x282   : > { %v1486_v33 = vadd.f32 %v1833_v41, %v1762_v63 }
 0x284   : > { %v1570_v59 = vadd.f32 %v3022_v17, %v1486_v33 }
 0x285   : > { %v1763_v26 = vpop.f32.mrb[42].mxu0 }
 0x286   : > { %1583 = vst [vmem:[%s3029_s25 + $0x38] sm:$0xff] %v1570_v59  ;;  %v1764_v1 = vpop.f32.mrb[43].mxu0 }
 0x287   : > { %v1834_v51 = vpop.f32.mrb[42].mxu1  ;;  %v1765_v35 = vadd.f32 %v1764_v1, %v1763_v26 }
 0x288   : > { %v1835_v23 = vpop.f32.mrb[43].mxu1 }
 0x289   : > { %v1836_v43 = vadd.f32 %v1835_v23, %v1834_v51 }
 0x28a   : > { %v1766_v34 = vpop.f32.mrb[44].mxu0 }
 0x28b   : > { %v1491_v38 = vadd.f32 %v1836_v43, %v1765_v35  ;;  %v1767_v24 = vpop.f32.mrb[45].mxu0 }
 0x28c   : > { %v1837_v46 = vpop.f32.mrb[44].mxu1  ;;  %v1768_v25 = vadd.f32 %v1767_v24, %v1766_v34 }
 0x28d   : > { %v1571_v49 = vadd.f32 %v3022_v17, %v1491_v38  ;;  %v1838_v4 = vpop.f32.mrb[45].mxu1 }
 0x28e   : > { %v1839_v31 = vadd.f32 %v1838_v4, %v1837_v46 }
 0x28f   : > { %1584 = vst [vmem:[%s3029_s25 + $0x40] sm:$0xff] %v1571_v49 }
 0x290   : > { %v1496_v47 = vadd.f32 %v1839_v31, %v1768_v25 }
 0x292   : > { %v1572_v60 = vadd.f32 %v3022_v17, %v1496_v47 }
 0x293   : > { %v1769_v9 = vpop.f32.mrb[46].mxu0 }
 0x294   : > { %1585 = vst [vmem:[%s3029_s25 + $0x48] sm:$0xff] %v1572_v60  ;;  %v1840_v0 = vpop.f32.mrb[46].mxu1  ;;  %v1770_v8 = vpop.f32.mrb[47].mxu0 }
 0x295   : > { %v1771_v28 = vadd.f32 %v1770_v8, %v1769_v9  ;;  %v1841_v6 = vpop.f32.mrb[47].mxu1 }
 0x296   : > { %v1842_v16 = vadd.f32 %v1841_v6, %v1840_v0 }
 0x298   : > { %v1501_v10 = vadd.f32 %v1842_v16, %v1771_v28  ;;  %v1772_v36 = vpop.f32.mrb[48].mxu0 }
 0x299   : > { %v1773_v62 = vpop.f32.mrb[49].mxu0 }
 0x29a   : > { %v1573_v45 = vadd.f32 %v3022_v17, %v1501_v10  ;;  %v1774_v20 = vadd.f32 %v1773_v62, %v1772_v36 }
 0x29b   : > { %v1843_v61 = vpop.f32.mrb[48].mxu1 }
 0x29c   : > { %1586 = vst [vmem:[%s3029_s25 + $0x50] sm:$0xff] %v1573_v45  ;;  %v1844_v5 = vpop.f32.mrb[49].mxu1 }
 0x29d   : > { %v1845_v27 = vadd.f32 %v1844_v5, %v1843_v61 }
 0x29f   : > { %v1775_v19 = vpop.f32.mrb[50].mxu0  ;;  %v1506_v39 = vadd.f32 %v1845_v27, %v1774_v20 }
 0x2a0   : > { %v1776_v18 = vpop.f32.mrb[51].mxu0  ;;  %v1846_v22 = vpop.f32.mrb[50].mxu1 }
 0x2a1   : > { %v1777_v54 = vadd.f32 %v1776_v18, %v1775_v19  ;;  %v1574_v15 = vadd.f32 %v3022_v17, %v1506_v39  ;;  %v1847_v44 = vpop.f32.mrb[51].mxu1 }
 0x2a2   : > { %v1848_v48 = vadd.f32 %v1847_v44, %v1846_v22 }
 0x2a3   : > { %1587 = vst [vmem:[%s3029_s25 + $0x58] sm:$0xff] %v1574_v15 }
 0x2a4   : > { %v1511_v3 = vadd.f32 %v1848_v48, %v1777_v54 }
 0x2a6   : > { %v1575_v13 = vadd.f32 %v3022_v17, %v1511_v3 }
 0x2a8   : > { %1588 = vst [vmem:[%s3029_s25 + $0x60] sm:$0xff] %v1575_v13 }
 0x2a9 PF: > { %s17_s20 = sadd.s32 1, %s2217_s20   ;;  %s3175_s18 = smov %s2213_s19 }
 0x2aa   : > { %p14_p3 = scmp.ge.s32.totalorder %s17_s20, 4   ;;  %s3176_s19 = smov %s3178_s22 }
 0x2ac   :  { %16 = sbr.rel (!%p14_p3) target bundleno = 3 (0x3), region = 92 }
 0x2b3   :  { %1611 = vsyncpa [#allocation4], 1 }
 0x2b4   :  { %1613 = vsyncpa [#allocation4 + $0x1], 1 }
 0x2b5   :  { %1614 = vsyncpa [#allocation6], 1 }

</bundles_post_ra>
